<compile_context>
chip_gen: v7x
topology: tpu7x:2x2x1
jax: 0.10.0
libtpu: 0.0.40
codegen_flags: <defaults>
</compile_context>

<pallas_src>
import jax
import jax.numpy as jnp
import numpy as np
from jax.experimental import pallas as pl
from jax.experimental.pallas import tpu as pltpu


# ---------------------------------------------------------------------------
# Fused kernel: conv1 + pool + relu + conv2 + pool + relu for one batch tile
# ---------------------------------------------------------------------------
def _fused_net_kernel(p1_ref, w1_ref, b1_ref, w2_ref, b2_ref, o_ref):
    # p1_ref: (2, RB, 144)   layer-1 row patches, dy1-major; RB = (TB+1)*16
    #                        row = (img, e=p1h%2 [8-row half], q=p1h//2), feat = kh*28+iw
    # w1_ref: (144, 256)     block conv1 weights; cols = dx1*128 + p1w*10 + ci
    # b1_ref: (1, 128)       conv1 bias at lane p1w*10 + ci
    # w2_ref: (5, 128, 256)  block conv2 weights per kh; rows p1w*10+ci, cols dx*128+pw*20+co
    # b2_ref: (1, 128)       conv2 bias at lane pw*20 + co
    # o_ref : (TB*8, 128)    valid rows: 0..3 of every 8; valid lanes: 0..79 (pw*20+co)
    m2 = o_ref.shape[0] * 2                      # TB * 16 rows of real images

    # ---- layer 1: two dy1 passes -> row-tap max, col-tap max on lane slabs, bias, relu
    w1 = w1_ref[...]
    a0 = jnp.dot(p1_ref[0], w1, preferred_element_type=jnp.float32)   # pool tap dy1 = 0
    a1 = jnp.dot(p1_ref[1], w1, preferred_element_type=jnp.float32)   # pool tap dy1 = 1
    m1 = jnp.maximum(a0, a1)                                          # pool over dy1
    y1 = jnp.maximum(m1[:, 0:128], m1[:, 128:256])                    # pool over dx1
    y1 = jnp.maximum(y1 + b1_ref[...], 0.0)      # (RB, 128), resident in vregs/VMEM

    # ---- layer 2: conv2 = 5 row-shifted matmuls per pooling row-tap dy, then max over
    #      dy (the two accumulators) and dx (lane slabs), bias, relu.
    accs = []
    for dy in range(2):
        acc = None
        for kh in range(5):
            # y1 rows are parity-split per image, so the stride-2 pooled access becomes a
            # plain static row shift: s = (p1h%2)*8 + p1h//2 with p1h = dy + kh
            s = ((dy + kh) % 2) * 8 + (dy + kh) // 2
            t = jnp.dot(y1[s:s + m2, :], w2_ref[kh],
                        preferred_element_type=jnp.float32)
            acc = t if acc is None else acc + t
        accs.append(acc)
    z = jnp.maximum(accs[0], accs[1])                    # pool over dy (rows)
    z = jnp.maximum(z[:, 0:128], z[:, 128:256])          # pool over dx (lane slabs)
    z = jnp.maximum(z + b2_ref[...], 0.0)                # (TB*16, 128)

    # compact rows 2x: keep the first 8 of every 16 (valid pooled rows live at 0..3)
    tb = m2 // 16
    o_ref[...] = z.reshape(tb, 16, 128)[:, 0:8, :].reshape(tb * 8, 128)


# ---------------------------------------------------------------------------
# Wrapper-side glue (XLA): patch building, block-weight construction, tiling
# ---------------------------------------------------------------------------
def _build_layer1_patches(x_img, tb, g):
    """x_img (N,28,28) -> (2, g*(tb+1)*16, 144) layer-1 row patches, dy1-major.

    Per-image row order: e*8 + q with p1h = 2q + e (q in 0..5, rows 6..7 are zero pad);
    one zero "ghost image" of 16 rows is appended per tile so in-kernel row shifts of up
    to 10 never slice out of bounds.  Feature order kh*28 + iw, zero padded 140 -> 144.
    """
    n = x_img.shape[0]
    npad = g * tb
    x_img = jnp.pad(x_img, ((0, npad - n), (0, 0), (0, 0)))
    idx = np.zeros((2, 2, 6, 5), np.int32)          # (dy1, e, q, kh) -> image row
    for dy1 in range(2):
        for e in range(2):
            for q in range(6):
                for kh in range(5):
                    idx[dy1, e, q, kh] = 4 * q + 2 * e + dy1 + kh
    p = x_img[:, idx, :]                            # (npad, 2, 2, 6, 5, 28)
    p = jnp.transpose(p, (1, 0, 2, 3, 4, 5))        # (2, npad, 2, 6, 5, 28)
    p = p.reshape(2, npad, 2, 6, 140)
    p = jnp.pad(p, ((0, 0), (0, 0), (0, 0), (0, 2), (0, 0)))    # q rows 6 -> 8
    p = p.reshape(2, g, tb, 16, 140)
    p = jnp.pad(p, ((0, 0), (0, 0), (0, 1), (0, 0), (0, 0)))    # ghost image per tile
    p = p.reshape(2, g * (tb + 1) * 16, 140)
    return jnp.pad(p, ((0, 0), (0, 0), (0, 4)))                 # K 140 -> 144


def _build_w1_block(w1):
    """w1 (10,1,5,5) -> (144,256); rows kh*28+iw, cols dx1*128 + p1w*10 + ci."""
    onehot = np.zeros((28, 2, 12, 5), np.float32)
    for dx1 in range(2):
        for p1w in range(12):
            for kw in range(5):
                onehot[2 * p1w + dx1 + kw, dx1, p1w, kw] = 1.0
    w = jnp.einsum('idpk,chk->hidpc', jnp.asarray(onehot), w1.reshape(10, 5, 5))
    w = w.reshape(140, 2, 120)
    w = jnp.pad(w, ((0, 4), (0, 0), (0, 8)))
    return w.reshape(144, 256)


def _build_w2_block(w2):
    """w2 (20,10,5,5) -> (5,128,256); per kh: rows p1w*10+ci, cols dx*128 + pw*20 + co."""
    onehot = np.zeros((12, 2, 4, 5), np.float32)
    for dx in range(2):
        for pw in range(4):
            for kw in range(5):
                onehot[2 * pw + dx + kw, dx, pw, kw] = 1.0
    w = jnp.einsum('wdpk,cihk->hwidpc', jnp.asarray(onehot), w2)
    w = w.reshape(5, 120, 2, 80)
    w = jnp.pad(w, ((0, 0), (0, 8), (0, 0), (0, 48)))
    return w.reshape(5, 128, 256)


@jax.jit
def net_forward(x_nchw, w1, b1, w2, b2):
    n, c, h, w = x_nchw.shape
    assert (c, h, w) == (1, 28, 28), "fused kernel is specialized to 1x28x28 MNIST input"
    x_img = x_nchw.reshape(n, 28, 28)

    # >=2 grid steps (v7x megacore) and <=~32 images per step; batch zero-padded to g*tb
    g = max(2, pl.cdiv(n, 32))
    tb = pl.cdiv(n, g)

    p1 = _build_layer1_patches(x_img, tb, g)        # (2, g*(tb+1)*16, 144)
    w1blk = _build_w1_block(w1)                     # (144, 256)
    w2blk = _build_w2_block(w2)                     # (5, 128, 256)
    b1row = jnp.pad(jnp.tile(b1, 12), (0, 8)).reshape(1, 128)
    b2row = jnp.pad(jnp.tile(b2, 4), (0, 48)).reshape(1, 128)

    rb = (tb + 1) * 16
    out = pl.pallas_call(
        _fused_net_kernel,
        out_shape=jax.ShapeDtypeStruct((g * tb * 8, 128), jnp.float32),
        grid=(g,),
        in_specs=[
            pl.BlockSpec((2, rb, 144), lambda i: (0, i, 0)),
            pl.BlockSpec((144, 256), lambda i: (0, 0)),
            pl.BlockSpec((1, 128), lambda i: (0, 0)),
            pl.BlockSpec((5, 128, 256), lambda i: (0, 0, 0)),
            pl.BlockSpec((1, 128), lambda i: (0, 0)),
        ],
        out_specs=pl.BlockSpec((tb * 8, 128), lambda i: (i, 0)),
        compiler_params=pltpu.CompilerParams(
            dimension_semantics=("parallel",),
            vmem_limit_bytes=32 * 1024 * 1024,
        ),
    )(p1, w1blk, b1row, w2blk, b2row)

    # unpack: rows (img, ph in 0..3), lanes pw*20+co  ->  torch x.view(batch,-1) order
    y = out.reshape(g * tb, 8, 128)[:n, 0:4, 0:80]
    y = y.reshape(n, 4, 4, 20)                      # (n, ph, pw, co)
    return jnp.transpose(y, (0, 3, 1, 2)).reshape(n, -1)


# ---------------------------------------------------------------------------
# Pure-JAX reference (independent of the Pallas path) for a correctness check
# ---------------------------------------------------------------------------
def reference_forward(x, w1, b1, w2, b2):
    def block(x, w, b):
        y = jax.lax.conv_general_dilated(
            x, w, (1, 1), "VALID",
            dimension_numbers=("NCHW", "OIHW", "NCHW"),
            precision=jax.lax.Precision.HIGHEST,
        ) + b[None, :, None, None]
        y = jax.lax.reduce_window(y, -jnp.inf, jax.lax.max,
                                  (1, 1, 2, 2), (1, 1, 2, 2), "VALID")
        return jnp.maximum(y, 0.0)

    y = block(x, w1, b1)
    y = block(y, w2, b2)
    return y.reshape(y.shape[0], -1)


if __name__ == "__main__":
    key = jax.random.PRNGKey(0)
    k1, k2, k3, k4, kx = jax.random.split(key, 5)

    # deterministic synthetic parameters (shapes from Net.__init__)
    w1 = jax.random.normal(k1, (10, 1, 5, 5), jnp.float32) * 0.1
    b1 = jax.random.normal(k2, (10,), jnp.float32) * 0.1
    w2 = jax.random.normal(k3, (20, 10, 5, 5), jnp.float32) * 0.1
    b2 = jax.random.normal(k4, (20,), jnp.float32) * 0.1

    # MNIST-like input, small batch (NCHW like PyTorch)
    x = jax.random.normal(kx, (2, 1, 28, 28), jnp.float32)

    out = net_forward(x, w1, b1, w2, b2)
    out = jax.block_until_ready(out)
    assert out.shape == (2, 320), out.shape

    ref = jax.block_until_ready(reference_forward(x, w1, b1, w2, b2))
    np.testing.assert_allclose(np.asarray(out), np.asarray(ref), rtol=2e-3, atol=2e-3)

    print("KERNEL_OK")
</pallas_src>

<mosaic_0001>
module attributes {stable_mosaic.version = 11 : i64} {
  func.func @_fused_net_kernel(%arg0: i32, %arg1: memref<2x32x144xf32, #tpu.memory_space<vmem>>, %arg2: memref<144x256xf32, #tpu.memory_space<vmem>>, %arg3: memref<1x128xf32, #tpu.memory_space<vmem>>, %arg4: memref<5x128x256xf32, #tpu.memory_space<vmem>>, %arg5: memref<1x128xf32, #tpu.memory_space<vmem>>, %arg6: memref<8x128xf32, #tpu.memory_space<vmem>>) attributes {dimension_semantics = [#tpu.dimension_semantics<parallel>], iteration_bounds = array<i64: 2>, scalar_prefetch = 0 : i64, scratch_operands = 0 : i64, tpu.core_type = #tpu.core_type<tc>, window_params = [{transform_indices = @transform_0, window_bounds = array<i64: 2, 32, 144>}, {pipeline_mode = #tpu.pipeline_mode<synchronous>, transform_indices = @transform_1, window_bounds = array<i64: 144, 256>}, {pipeline_mode = #tpu.pipeline_mode<synchronous>, transform_indices = @transform_2, window_bounds = array<i64: 1, 128>}, {pipeline_mode = #tpu.pipeline_mode<synchronous>, transform_indices = @transform_3, window_bounds = array<i64: 5, 128, 256>}, {pipeline_mode = #tpu.pipeline_mode<synchronous>, transform_indices = @transform_4, window_bounds = array<i64: 1, 128>}, {transform_indices = @transform_5, window_bounds = array<i64: 8, 128>}]} {
    %c0 = arith.constant 0 : index
    %c0_0 = arith.constant 0 : index
    %0 = vector.load %arg2[%c0, %c0_0] : memref<144x256xf32, #tpu.memory_space<vmem>>, vector<144x256xf32>
    %c0_1 = arith.constant 0 : index
    %c0_2 = arith.constant 0 : index
    %c0_3 = arith.constant 0 : index
    %1 = vector.load %arg1[%c0_1, %c0_2, %c0_3] : memref<2x32x144xf32, #tpu.memory_space<vmem>>, vector<1x32x144xf32>
    %2 = vector.shape_cast %1 : vector<1x32x144xf32> to vector<32x144xf32>
    %cst = arith.constant dense<0.000000e+00> : vector<32x256xf32>
    %3 = tpu.matmul %2, %0, %cst {dimension_numbers = #tpu.dot_dimension_numbers<[1], [0], [0], [1], [0, 0, 1, 1], [], []>} : vector<32x144xf32>, vector<144x256xf32>, vector<32x256xf32> -> vector<32x256xf32>
    %c1 = arith.constant 1 : index
    %c0_4 = arith.constant 0 : index
    %c0_5 = arith.constant 0 : index
    %4 = vector.load %arg1[%c1, %c0_4, %c0_5] : memref<2x32x144xf32, #tpu.memory_space<vmem>>, vector<1x32x144xf32>
    %5 = vector.shape_cast %4 : vector<1x32x144xf32> to vector<32x144xf32>
    %cst_6 = arith.constant dense<0.000000e+00> : vector<32x256xf32>
    %6 = tpu.matmul %5, %0, %cst_6 {dimension_numbers = #tpu.dot_dimension_numbers<[1], [0], [0], [1], [0, 0, 1, 1], [], []>} : vector<32x144xf32>, vector<144x256xf32>, vector<32x256xf32> -> vector<32x256xf32>
    %7 = arith.maximumf %3, %6 : vector<32x256xf32>
    %8 = vector.extract_strided_slice %7 {offsets = [0, 0], sizes = [32, 128], strides = [1, 1]} : vector<32x256xf32> to vector<32x128xf32>
    %9 = vector.extract_strided_slice %7 {offsets = [0, 128], sizes = [32, 128], strides = [1, 1]} : vector<32x256xf32> to vector<32x128xf32>
    %10 = arith.maximumf %8, %9 : vector<32x128xf32>
    %c0_7 = arith.constant 0 : index
    %c0_8 = arith.constant 0 : index
    %11 = vector.load %arg3[%c0_7, %c0_8] : memref<1x128xf32, #tpu.memory_space<vmem>>, vector<1x128xf32>
    %12 = vector.broadcast %11 : vector<1x128xf32> to vector<32x128xf32>
    %13 = arith.addf %10, %12 : vector<32x128xf32>
    %cst_9 = arith.constant 0.000000e+00 : f32
    %14 = vector.broadcast %cst_9 : f32 to vector<32x128xf32>
    %15 = arith.maximumf %13, %14 : vector<32x128xf32>
    %16 = vector.extract_strided_slice %15 {offsets = [0, 0], sizes = [16, 128], strides = [1, 1]} : vector<32x128xf32> to vector<16x128xf32>
    %c0_10 = arith.constant 0 : index
    %c0_11 = arith.constant 0 : index
    %c0_12 = arith.constant 0 : index
    %17 = vector.load %arg4[%c0_10, %c0_11, %c0_12] : memref<5x128x256xf32, #tpu.memory_space<vmem>>, vector<1x128x256xf32>
    %18 = vector.shape_cast %17 : vector<1x128x256xf32> to vector<128x256xf32>
    %cst_13 = arith.constant dense<0.000000e+00> : vector<16x256xf32>
    %19 = tpu.matmul %16, %18, %cst_13 {dimension_numbers = #tpu.dot_dimension_numbers<[1], [0], [0], [1], [0, 0, 1, 1], [], []>} : vector<16x128xf32>, vector<128x256xf32>, vector<16x256xf32> -> vector<16x256xf32>
    %20 = vector.extract_strided_slice %15 {offsets = [8, 0], sizes = [16, 128], strides = [1, 1]} : vector<32x128xf32> to vector<16x128xf32>
    %c1_14 = arith.constant 1 : index
    %c0_15 = arith.constant 0 : index
    %c0_16 = arith.constant 0 : index
    %21 = vector.load %arg4[%c1_14, %c0_15, %c0_16] : memref<5x128x256xf32, #tpu.memory_space<vmem>>, vector<1x128x256xf32>
    %22 = vector.shape_cast %21 : vector<1x128x256xf32> to vector<128x256xf32>
    %cst_17 = arith.constant dense<0.000000e+00> : vector<16x256xf32>
    %23 = tpu.matmul %20, %22, %cst_17 {dimension_numbers = #tpu.dot_dimension_numbers<[1], [0], [0], [1], [0, 0, 1, 1], [], []>} : vector<16x128xf32>, vector<128x256xf32>, vector<16x256xf32> -> vector<16x256xf32>
    %24 = arith.addf %19, %23 : vector<16x256xf32>
    %25 = vector.extract_strided_slice %15 {offsets = [1, 0], sizes = [16, 128], strides = [1, 1]} : vector<32x128xf32> to vector<16x128xf32>
    %c2 = arith.constant 2 : index
    %c0_18 = arith.constant 0 : index
    %c0_19 = arith.constant 0 : index
    %26 = vector.load %arg4[%c2, %c0_18, %c0_19] : memref<5x128x256xf32, #tpu.memory_space<vmem>>, vector<1x128x256xf32>
    %27 = vector.shape_cast %26 : vector<1x128x256xf32> to vector<128x256xf32>
    %cst_20 = arith.constant dense<0.000000e+00> : vector<16x256xf32>
    %28 = tpu.matmul %25, %27, %cst_20 {dimension_numbers = #tpu.dot_dimension_numbers<[1], [0], [0], [1], [0, 0, 1, 1], [], []>} : vector<16x128xf32>, vector<128x256xf32>, vector<16x256xf32> -> vector<16x256xf32>
    %29 = arith.addf %24, %28 : vector<16x256xf32>
    %30 = vector.extract_strided_slice %15 {offsets = [9, 0], sizes = [16, 128], strides = [1, 1]} : vector<32x128xf32> to vector<16x128xf32>
    %c3 = arith.constant 3 : index
    %c0_21 = arith.constant 0 : index
    %c0_22 = arith.constant 0 : index
    %31 = vector.load %arg4[%c3, %c0_21, %c0_22] : memref<5x128x256xf32, #tpu.memory_space<vmem>>, vector<1x128x256xf32>
    %32 = vector.shape_cast %31 : vector<1x128x256xf32> to vector<128x256xf32>
    %cst_23 = arith.constant dense<0.000000e+00> : vector<16x256xf32>
    %33 = tpu.matmul %30, %32, %cst_23 {dimension_numbers = #tpu.dot_dimension_numbers<[1], [0], [0], [1], [0, 0, 1, 1], [], []>} : vector<16x128xf32>, vector<128x256xf32>, vector<16x256xf32> -> vector<16x256xf32>
    %34 = arith.addf %29, %33 : vector<16x256xf32>
    %35 = vector.extract_strided_slice %15 {offsets = [2, 0], sizes = [16, 128], strides = [1, 1]} : vector<32x128xf32> to vector<16x128xf32>
    %c4 = arith.constant 4 : index
    %c0_24 = arith.constant 0 : index
    %c0_25 = arith.constant 0 : index
    %36 = vector.load %arg4[%c4, %c0_24, %c0_25] : memref<5x128x256xf32, #tpu.memory_space<vmem>>, vector<1x128x256xf32>
    %37 = vector.shape_cast %36 : vector<1x128x256xf32> to vector<128x256xf32>
    %cst_26 = arith.constant dense<0.000000e+00> : vector<16x256xf32>
    %38 = tpu.matmul %35, %37, %cst_26 {dimension_numbers = #tpu.dot_dimension_numbers<[1], [0], [0], [1], [0, 0, 1, 1], [], []>} : vector<16x128xf32>, vector<128x256xf32>, vector<16x256xf32> -> vector<16x256xf32>
    %39 = arith.addf %34, %38 : vector<16x256xf32>
    %40 = vector.extract_strided_slice %15 {offsets = [8, 0], sizes = [16, 128], strides = [1, 1]} : vector<32x128xf32> to vector<16x128xf32>
    %c0_27 = arith.constant 0 : index
    %c0_28 = arith.constant 0 : index
    %c0_29 = arith.constant 0 : index
    %41 = vector.load %arg4[%c0_27, %c0_28, %c0_29] : memref<5x128x256xf32, #tpu.memory_space<vmem>>, vector<1x128x256xf32>
    %42 = vector.shape_cast %41 : vector<1x128x256xf32> to vector<128x256xf32>
    %cst_30 = arith.constant dense<0.000000e+00> : vector<16x256xf32>
    %43 = tpu.matmul %40, %42, %cst_30 {dimension_numbers = #tpu.dot_dimension_numbers<[1], [0], [0], [1], [0, 0, 1, 1], [], []>} : vector<16x128xf32>, vector<128x256xf32>, vector<16x256xf32> -> vector<16x256xf32>
    %44 = vector.extract_strided_slice %15 {offsets = [1, 0], sizes = [16, 128], strides = [1, 1]} : vector<32x128xf32> to vector<16x128xf32>
    %c1_31 = arith.constant 1 : index
    %c0_32 = arith.constant 0 : index
    %c0_33 = arith.constant 0 : index
    %45 = vector.load %arg4[%c1_31, %c0_32, %c0_33] : memref<5x128x256xf32, #tpu.memory_space<vmem>>, vector<1x128x256xf32>
    %46 = vector.shape_cast %45 : vector<1x128x256xf32> to vector<128x256xf32>
    %cst_34 = arith.constant dense<0.000000e+00> : vector<16x256xf32>
    %47 = tpu.matmul %44, %46, %cst_34 {dimension_numbers = #tpu.dot_dimension_numbers<[1], [0], [0], [1], [0, 0, 1, 1], [], []>} : vector<16x128xf32>, vector<128x256xf32>, vector<16x256xf32> -> vector<16x256xf32>
    %48 = arith.addf %43, %47 : vector<16x256xf32>
    %49 = vector.extract_strided_slice %15 {offsets = [9, 0], sizes = [16, 128], strides = [1, 1]} : vector<32x128xf32> to vector<16x128xf32>
    %c2_35 = arith.constant 2 : index
    %c0_36 = arith.constant 0 : index
    %c0_37 = arith.constant 0 : index
    %50 = vector.load %arg4[%c2_35, %c0_36, %c0_37] : memref<5x128x256xf32, #tpu.memory_space<vmem>>, vector<1x128x256xf32>
    %51 = vector.shape_cast %50 : vector<1x128x256xf32> to vector<128x256xf32>
    %cst_38 = arith.constant dense<0.000000e+00> : vector<16x256xf32>
    %52 = tpu.matmul %49, %51, %cst_38 {dimension_numbers = #tpu.dot_dimension_numbers<[1], [0], [0], [1], [0, 0, 1, 1], [], []>} : vector<16x128xf32>, vector<128x256xf32>, vector<16x256xf32> -> vector<16x256xf32>
    %53 = arith.addf %48, %52 : vector<16x256xf32>
    %54 = vector.extract_strided_slice %15 {offsets = [2, 0], sizes = [16, 128], strides = [1, 1]} : vector<32x128xf32> to vector<16x128xf32>
    %c3_39 = arith.constant 3 : index
    %c0_40 = arith.constant 0 : index
    %c0_41 = arith.constant 0 : index
    %55 = vector.load %arg4[%c3_39, %c0_40, %c0_41] : memref<5x128x256xf32, #tpu.memory_space<vmem>>, vector<1x128x256xf32>
    %56 = vector.shape_cast %55 : vector<1x128x256xf32> to vector<128x256xf32>
    %cst_42 = arith.constant dense<0.000000e+00> : vector<16x256xf32>
    %57 = tpu.matmul %54, %56, %cst_42 {dimension_numbers = #tpu.dot_dimension_numbers<[1], [0], [0], [1], [0, 0, 1, 1], [], []>} : vector<16x128xf32>, vector<128x256xf32>, vector<16x256xf32> -> vector<16x256xf32>
    %58 = arith.addf %53, %57 : vector<16x256xf32>
    %59 = vector.extract_strided_slice %15 {offsets = [10, 0], sizes = [16, 128], strides = [1, 1]} : vector<32x128xf32> to vector<16x128xf32>
    %c4_43 = arith.constant 4 : index
    %c0_44 = arith.constant 0 : index
    %c0_45 = arith.constant 0 : index
    %60 = vector.load %arg4[%c4_43, %c0_44, %c0_45] : memref<5x128x256xf32, #tpu.memory_space<vmem>>, vector<1x128x256xf32>
    %61 = vector.shape_cast %60 : vector<1x128x256xf32> to vector<128x256xf32>
    %cst_46 = arith.constant dense<0.000000e+00> : vector<16x256xf32>
    %62 = tpu.matmul %59, %61, %cst_46 {dimension_numbers = #tpu.dot_dimension_numbers<[1], [0], [0], [1], [0, 0, 1, 1], [], []>} : vector<16x128xf32>, vector<128x256xf32>, vector<16x256xf32> -> vector<16x256xf32>
    %63 = arith.addf %58, %62 : vector<16x256xf32>
    %64 = arith.maximumf %39, %63 : vector<16x256xf32>
    %65 = vector.extract_strided_slice %64 {offsets = [0, 0], sizes = [16, 128], strides = [1, 1]} : vector<16x256xf32> to vector<16x128xf32>
    %66 = vector.extract_strided_slice %64 {offsets = [0, 128], sizes = [16, 128], strides = [1, 1]} : vector<16x256xf32> to vector<16x128xf32>
    %67 = arith.maximumf %65, %66 : vector<16x128xf32>
    %c0_47 = arith.constant 0 : index
    %c0_48 = arith.constant 0 : index
    %68 = vector.load %arg5[%c0_47, %c0_48] : memref<1x128xf32, #tpu.memory_space<vmem>>, vector<1x128xf32>
    %69 = vector.broadcast %68 : vector<1x128xf32> to vector<16x128xf32>
    %70 = arith.addf %67, %69 : vector<16x128xf32>
    %cst_49 = arith.constant 0.000000e+00 : f32
    %71 = vector.broadcast %cst_49 : f32 to vector<16x128xf32>
    %72 = arith.maximumf %70, %71 : vector<16x128xf32>
    %73 = vector.shape_cast %72 : vector<16x128xf32> to vector<1x16x128xf32>
    %74 = vector.extract_strided_slice %73 {offsets = [0, 0, 0], sizes = [1, 8, 128], strides = [1, 1, 1]} : vector<1x16x128xf32> to vector<1x8x128xf32>
    %75 = vector.shape_cast %74 : vector<1x8x128xf32> to vector<8x128xf32>
    %c0_50 = arith.constant 0 : index
    %c0_51 = arith.constant 0 : index
    %76 = vector.load %arg6[%c0_50, %c0_51] : memref<8x128xf32, #tpu.memory_space<vmem>>, vector<8x128xf32>
    tpu.vector_store %arg6[%c0_50, %c0_51], %75 {strides = array<i32>} : memref<8x128xf32, #tpu.memory_space<vmem>>, vector<8x128xf32>,
    return
  }
  func.func @transform_0(%arg0: i32) -> (i32, i32, i32) {
    %c0_i32 = arith.constant 0 : i32
    %c0_i32_0 = arith.constant 0 : i32
    %c0_i32_1 = arith.constant 0 : i32
    return %c0_i32, %arg0, %c0_i32_0 : i32, i32, i32
  }
  func.func @transform_1(%arg0: i32) -> (i32, i32) {
    %c0_i32 = arith.constant 0 : i32
    %c0_i32_0 = arith.constant 0 : i32
    %c0_i32_1 = arith.constant 0 : i32
    return %c0_i32, %c0_i32_0 : i32, i32
  }
  func.func @transform_2(%arg0: i32) -> (i32, i32) {
    %c0_i32 = arith.constant 0 : i32
    %c0_i32_0 = arith.constant 0 : i32
    %c0_i32_1 = arith.constant 0 : i32
    return %c0_i32, %c0_i32_0 : i32, i32
  }
  func.func @transform_3(%arg0: i32) -> (i32, i32, i32) {
    %c0_i32 = arith.constant 0 : i32
    %c0_i32_0 = arith.constant 0 : i32
    %c0_i32_1 = arith.constant 0 : i32
    %c0_i32_2 = arith.constant 0 : i32
    return %c0_i32, %c0_i32_0, %c0_i32_1 : i32, i32, i32
  }
  func.func @transform_4(%arg0: i32) -> (i32, i32) {
    %c0_i32 = arith.constant 0 : i32
    %c0_i32_0 = arith.constant 0 : i32
    %c0_i32_1 = arith.constant 0 : i32
    return %c0_i32, %c0_i32_0 : i32, i32
  }
  func.func @transform_5(%arg0: i32) -> (i32, i32) {
    %c0_i32 = arith.constant 0 : i32
    %c0_i32_0 = arith.constant 0 : i32
    return %arg0, %c0_i32 : i32, i32
  }
}

</mosaic_0001>

<bundles_post_ra>
// kernel: tile.19
= control target key start
LH: loop header
LB: loop body
LE: loop exit
PB: predicated region body
PF: predicated region fallthrough
CT: control target
= control target key end

     0   :  { %vm7_vm0 = vcmask 162816   ;;  %s37_s8 = smov 20   ;;  %s38_s9 = smov 40   ;;  %vm13_vm1 = vcmask 654816   ;;  %vm19_vm2 = vcmask 490816   ;;  %vm25_vm3 = vcmask 326816   ;;  %s55_s0 = inlined_call_operand.vmem [shape: f32[4,20], index: 0, kind: input, shape index: {}]   ;;  %s56_s1 = inlined_call_operand.vmem [shape: f32[80], index: 1, kind: output, shape index: {}]  }
   0x1   :  { %v4_v0 = vld [vmem:[%s55_s0] sm:$0xf]  ;;  %s36_s0 = smov 60  }
   0x2   :  { %5 = vst [vmem:[#allocation1] sm:$0xf] %v4_v0 }
   0x9   :  { %v10_v1 = vld [vmem:[#allocation1 + $0x3] sm:$0x1]   ;;  %v22_v2 = vld [vmem:[#allocation1 + $0x1] sm:$0x1]   ;;  %v6_v3 = vld [vmem:[#allocation1] sm:$0x1]  }
   0xa   :  { %11 = vrot.lane.b32.xlu0 %v10_v1, %s36_s0  ;;  %23 = vrot.lane.b32.xlu1 %v22_v2, %s37_s8  ;;  %v16_v4 = vld [vmem:[#allocation1 + $0x2] sm:$0x1]   ;;  %8 = vst.msk [vmem:[#allocation0] sm:$0x1] %vm7_vm0, %v6_v3  }
   0xe   :  { %17 = vrot.lane.b32.xlu0 %v16_v4, %s38_s9 }
  0x7c   :  { %v12_v5 = vpop.permute.xlu0 %11   ;;  %v24_v6 = vpop.permute.xlu1 %23  }
  0x7d   :  { %14 = vst.msk [vmem:[#allocation0] sm:$0x1] %vm13_vm1, %v12_v5  }
  0x80   :  { %v18_v7 = vpop.permute.xlu0 %17  }
  0x81   :  { %20 = vst.msk [vmem:[#allocation0] sm:$0x1] %vm19_vm2, %v18_v7  }
  0x82   :  { %26 = vst.msk [vmem:[#allocation0] sm:$0x1] %vm25_vm3, %v24_v6  }
  0x89   :  { %v30_v8 = vld [vmem:[#allocation0] sm:$0x1] }
  0x8a   :  { %32 = vst [vmem:[%s56_s1] sm:$0x1] %v30_v8 }

// kernel: tile.18
= control target key start
LH: loop header
LB: loop body
LE: loop exit
PB: predicated region body
PF: predicated region fallthrough
CT: control target
= control target key end

     0   :  { %2 = vsyncpa [#allocation1], 0  ;;  %s44_s6 = smov [#allocation0]   ;;  %s70_s0 = inlined_call_operand.hbm [shape: f32[20], index: 0, kind: input, shape index: {}]   ;;  %s71_s1 = inlined_call_operand.vmem [shape: f32[4,20], index: 1, kind: output, shape index: {}]  }
   0x1   :  { %s9_s7 = sshll.u32 %s44_s6, 4  ;;  %s20_s10 = scalar_lea.hbm %s70_s0, 16  ;;  %s10_s7 = int_to_ptr.vmem [resolvable:$true] %s9_s7 }
   0x2   :  { %p21_p0 = scmp.ne.s32.totalorder %s70_s0, %s20_s10  ;;  %p24_p1 = scmp.lt.u32.totalorder %s20_s10, %s70_s0 }
   0x4   :  { %p26_p2 = pnand %p24_p1, %p21_p0 }
   0x6   :  { %29 = shalt.err (!%p26_p2)
}
   0x7   :  { %s30_s15 = scalar_lea.vmem %s10_s7, 16  ;;  %s34_s16 = scalar_lea.vmem %s10_s7, 32 }
   0x8   :  { %p31_p3 = scmp.ne.s32.totalorder %s10_s7, %s30_s15  ;;  %p35_p4 = scmp.lt.s32.totalorder %s10_s7, %s10_s7 }
   0x9   :  { %p36_p5 = scmp.lt.s32.totalorder %s34_s16, %s30_s15 }
   0xb   :  { %p37_p6 = por %p36_p5, %p35_p4 }
   0xd   :  { %p38_p7 = pnand %p37_p6, %p31_p3 }
   0xf   :  { %41 = shalt.err (!%p38_p7)
}
  0x10   :  { %12 = dma.hbm_to_vmem [thread:$0]  %s70_s0, 16, %s10_s7, [#allocation1]  }
  0x11   :  { %42 = dma.done.wait [#allocation1], 16  }
  0x12   :  { %43 = vsyncadd [#allocation1], 4294967280  ;;  %v16_v0 = vld [vmem:[#allocation0] ss:$0 sm:$0xff] }
  0x13   :  { %17 = vst [vmem:[%s71_s1] sm:$0xf] %v16_v0 }
  0x14   :  { %18 = vsyncpa [#allocation1], 1 }

// kernel: tile.13
= control target key start
LH: loop header
LB: loop body
LE: loop exit
PB: predicated region body
PF: predicated region fallthrough
CT: control target
= control target key end

     0   :  { %2 = vsyncpa [#allocation1], 0  ;;  %s47_s6 = smov [#allocation0]   ;;  %s76_s0 = inlined_call_operand.hbm [shape: f32[10], index: 0, kind: input, shape index: {}]   ;;  %s77_s1 = inlined_call_operand.vmem [shape: f32[12,10], index: 1, kind: output, shape index: {}]  }
   0x1   :  { %s9_s7 = sshll.u32 %s47_s6, 4  ;;  %s23_s10 = scalar_lea.hbm %s76_s0, 16  ;;  %s10_s7 = int_to_ptr.vmem [resolvable:$true] %s9_s7 }
   0x2   :  { %p24_p0 = scmp.ne.s32.totalorder %s76_s0, %s23_s10  ;;  %p27_p1 = scmp.lt.u32.totalorder %s23_s10, %s76_s0 }
   0x4   :  { %p29_p2 = pnand %p27_p1, %p24_p0 }
   0x6   :  { %32 = shalt.err (!%p29_p2)
}
   0x7   :  { %s33_s15 = scalar_lea.vmem %s10_s7, 16  ;;  %s37_s16 = scalar_lea.vmem %s10_s7, 32 }
   0x8   :  { %p34_p3 = scmp.ne.s32.totalorder %s10_s7, %s33_s15  ;;  %p38_p4 = scmp.lt.s32.totalorder %s10_s7, %s10_s7 }
   0x9   :  { %p39_p5 = scmp.lt.s32.totalorder %s37_s16, %s33_s15 }
   0xb   :  { %p40_p6 = por %p39_p5, %p38_p4 }
   0xd   :  { %p41_p7 = pnand %p40_p6, %p34_p3 }
   0xf   :  { %44 = shalt.err (!%p41_p7)
}
  0x10   :  { %12 = dma.hbm_to_vmem [thread:$0]  %s76_s0, 16, %s10_s7, [#allocation1]  }
  0x11   :  { %45 = dma.done.wait [#allocation1], 16  }
  0x12   :  { %46 = vsyncadd [#allocation1], 4294967280  ;;  %v16_v0 = vld [vmem:[#allocation0] ss:$0 sm:$0xff] }
  0x13   :  { %17 = vst [vmem:[%s77_s1] sm:$0xff] %v16_v0  ;;  %21 = vst [vmem:[%s77_s1 + $0x8] sm:$0xff] %v16_v0 }
  0x14   :  { %20 = vsyncpa [#allocation1], 1 }

// kernel: tile.14
= control target key start
LH: loop header
LB: loop body
LE: loop exit
PB: predicated region body
PF: predicated region fallthrough
CT: control target
= control target key end

     0   :  { %s99_s10 = smov 110   ;;  %s100_s11 = smov 90   ;;  %vm3_vm0 = vcmask 80896   ;;  %vm9_vm1 = vcmask 982896   ;;  %vm15_vm2 = vcmask 900896   ;;  %vm21_vm3 = vcmask 818896   ;;  %s159_s0 = inlined_call_operand.vmem [shape: f32[12,10], index: 0, kind: input, shape index: {}]   ;;  %s160_s1 = inlined_call_operand.vmem [shape: f32[120], index: 1, kind: output, shape index: {}]  }
   0x1   :  { %v77_v0 = vld [vmem:[%s159_s0 + $0xb] sm:$0x1]   ;;  %v79_v1 = vld [vmem:[%s159_s0 + $0x9] sm:$0x1]   ;;  %v78_v2 = vld [vmem:[%s159_s0 + $0xa] sm:$0x1]  }
   0x2   :  { %7 = vrot.lane.b32.xlu0 %v77_v0, %s99_s10  ;;  %19 = vrot.lane.b32.xlu1 %v79_v1, %s100_s11  ;;  %v80_v3 = vld [vmem:[%s159_s0 + $0x8] sm:$0x1]   ;;  %s101_s16 = smov 100   ;;  %s102_s17 = smov 80   ;;  %v81_v4 = vld [vmem:[%s159_s0 + $0x7] sm:$0x1]  }
   0x3   :  { %v2_v5 = vld [vmem:[%s159_s0] sm:$0x1]   ;;  %v82_v6 = vld [vmem:[%s159_s0 + $0x6] sm:$0x1]   ;;  %s103_s24 = smov 70   ;;  %s104_s25 = smov 60  }
   0x4   :  { %4 = vst.msk [vmem:[#allocation0] sm:$0x1] %vm3_vm0, %v2_v5   ;;  %v83_v7 = vld [vmem:[%s159_s0 + $0x5] sm:$0x1]   ;;  %v84_v8 = vld [vmem:[%s159_s0 + $0x4] sm:$0x1]  }
   0x5   :  { %s105_s30 = smov 50   ;;  %s106_s2 = smov 40   ;;  %v85_v9 = vld [vmem:[%s159_s0 + $0x3] sm:$0x1]   ;;  %v86_v10 = vld [vmem:[%s159_s0 + $0x2] sm:$0x1]  }
   0x6   :  { %13 = vrot.lane.b32.xlu0 %v78_v2, %s101_s16  ;;  %25 = vrot.lane.b32.xlu1 %v80_v3, %s102_s17  ;;  %s107_s7 = smov 30   ;;  %s108_s8 = smov 20   ;;  %v87_v11 = vld [vmem:[%s159_s0 + $0x1] sm:$0x1]   ;;  %vm27_vm4 = vcmask 736896   ;;  %vm33_vm5 = vcmask 654896  }
   0x7   :  { %s109_s0 = smov 10   ;;  %vm39_vm6 = vcmask 572896   ;;  %vm45_vm7 = vcmask 490896   ;;  %vm51_vm8 = vcmask 408896   ;;  %vm57_vm9 = vcmask 326896  }
   0x8   :  { %vm63_vm10 = vcmask 244896   ;;  %vm69_vm11 = vcmask 162896  }
   0xa   :  { %31 = vrot.lane.b32.xlu0 %v81_v4, %s103_s24  ;;  %37 = vrot.lane.b32.xlu1 %v82_v6, %s104_s25 }
   0xe   :  { %43 = vrot.lane.b32.xlu0 %v83_v7, %s105_s30  ;;  %49 = vrot.lane.b32.xlu1 %v84_v8, %s106_s2 }
  0x12   :  { %55 = vrot.lane.b32.xlu0 %v85_v9, %s107_s7  ;;  %61 = vrot.lane.b32.xlu1 %v86_v10, %s108_s8 }
  0x16   :  { %67 = vrot.lane.b32.xlu0 %v87_v11, %s109_s0 }
  0x74   :  { %v8_v12 = vpop.permute.xlu0 %7   ;;  %v20_v13 = vpop.permute.xlu1 %19  }
  0x75   :  { %10 = vst.msk [vmem:[#allocation0] sm:$0x1] %vm9_vm1, %v8_v12  }
  0x78   :  { %v14_v14 = vpop.permute.xlu0 %13   ;;  %v26_v15 = vpop.permute.xlu1 %25  }
  0x79   :  { %16 = vst.msk [vmem:[#allocation0] sm:$0x1] %vm15_vm2, %v14_v14  }
  0x7a   :  { %22 = vst.msk [vmem:[#allocation0] sm:$0x1] %vm21_vm3, %v20_v13  }
  0x7b   :  { %28 = vst.msk [vmem:[#allocation0] sm:$0x1] %vm27_vm4, %v26_v15  }
  0x7c   :  { %v32_v16 = vpop.permute.xlu0 %31   ;;  %v38_v17 = vpop.permute.xlu1 %37  }
  0x7d   :  { %34 = vst.msk [vmem:[#allocation0] sm:$0x1] %vm33_vm5, %v32_v16  }
  0x7e   :  { %40 = vst.msk [vmem:[#allocation0] sm:$0x1] %vm39_vm6, %v38_v17  }
  0x80   :  { %v44_v18 = vpop.permute.xlu0 %43   ;;  %v50_v19 = vpop.permute.xlu1 %49  }
  0x81   :  { %46 = vst.msk [vmem:[#allocation0] sm:$0x1] %vm45_vm7, %v44_v18  }
  0x82   :  { %52 = vst.msk [vmem:[#allocation0] sm:$0x1] %vm51_vm8, %v50_v19  }
  0x84   :  { %v56_v20 = vpop.permute.xlu0 %55   ;;  %v62_v21 = vpop.permute.xlu1 %61  }
  0x85   :  { %58 = vst.msk [vmem:[#allocation0] sm:$0x1] %vm57_vm9, %v56_v20  }
  0x86   :  { %64 = vst.msk [vmem:[#allocation0] sm:$0x1] %vm63_vm10, %v62_v21  }
  0x88   :  { %v68_v22 = vpop.permute.xlu0 %67  }
  0x89   :  { %70 = vst.msk [vmem:[#allocation0] sm:$0x1] %vm69_vm11, %v68_v22  }
  0x90   :  { %v74_v23 = vld [vmem:[#allocation0] sm:$0x1] }
  0x91   :  { %76 = vst [vmem:[%s160_s1] sm:$0x1] %v74_v23 }

// kernel: net_forward.1
= control target key start
LH: loop header
LB: loop body
LE: loop exit
PB: predicated region body
PF: predicated region fallthrough
CT: control target
= control target key end

     0   :  { %s2231_s18 = smov 0   ;;  %s2233_s19 = smov 0   ;;  %s2993_s0 = inlined_call_operand.vmem [shape: f32[2,64,144], index: 0, kind: input, shape index: {}]   ;;  %s2994_s1 = inlined_call_operand.vmem [shape: f32[144,256], index: 1, kind: input, shape index: {}]   ;;  %s2995_s2 = inlined_call_operand.vmem [shape: f32[1,128], index: 2, kind: input, shape index: {}]   ;;  %s2996_s3 = inlined_call_operand.vmem [shape: f32[5,128,256], index: 3, kind: input, shape index: {}]   ;;  %s2997_s4 = inlined_call_operand.vmem [shape: f32[1,128], index: 4, kind: input, shape index: {}]   ;;  %s2998_s5 = inlined_call_operand.vmem [shape: f32[16,128], index: 5, kind: output, shape index: {}]  }
   0x1   :  { %s2235_s20 = smov 0  }
   0x2 LB: > { %s1582_s21 = sadd.s32 4294967295, %s2198_s20   ;;  %s2248_s22 = sadd.s32 1, %s2198_s20   ;;  %s2198_s20 = sphi %s2235_s20, %s3001_s20   ;;  %s2194_s19 = sphi %s2233_s19, %s3000_s19   ;;  %s2190_s18 = sphi %s2231_s18, %s2999_s18  }
   0x3   : > { %s19_s23 = ssub.s32 %s2198_s20, %s2248_s22  ;;  %s22_s24 = sadd.s32 1, %s2194_s19 }
   0x4   : > { %p20_p0 = scmp.eq.s32.totalorder %s19_s23, 0  ;;  %p29_p1 = scmp.ne.s32.totalorder %s2194_s19, %s2190_s18 }
   0x5   : > { %p30_p2 = scmp.eq.s32.totalorder %s2198_s20, 0  ;;  %p1585_p4 = scmp.ge.s32.totalorder %s2198_s20, 2 }
   0x6   : > { %s2257_s25 = scalar_select %p20_p0, %s2194_s19, %s22_s24  }
   0x7   : > { %p31_p3 = por %p30_p2, %p29_p1  ;;  %177 = sbr.rel (%p1585_p4) target bundleno = 26 (0x1a), region = 32 }
   0xe   : > { %180 = sbr.rel (!%p31_p3) target bundleno = 26 (0x1a), region = 36  ;;  %s182_s26 = sand.u32 (%p31_p3), 1, %s2194_s19  }
   0xf   : > { %s1742_s27 = sshll.u32 (%p31_p3), %s2198_s20, 6  ;;  %s1586_s28 = sshll.u32 (%p31_p3), %s182_s26, 7 }
  0x10   : > { %s2265_s6 = scalar_lea.vmem (%p31_p3), %s2993_s0, %s1742_s27  ;;  %s184_s7 = scalar_lea.vmem (%p31_p3), [#allocation2], %s1586_s28 }
  0x11   : > { %v201_v0 = vld [vmem:[%s2265_s6] sm:$0xff] (%p31_p3)  ;;  %v203_v1 = vld [vmem:[%s2265_s6 + $0x8] sm:$0xff] (%p31_p3)  ;;  %v205_v2 = vld [vmem:[%s2265_s6 + $0x10] sm:$0xff] (%p31_p3) }
  0x12   : > { %202 = vst [vmem:[%s184_s7] sm:$0xff] (%p31_p3), %v201_v0  ;;  %204 = vst [vmem:[%s184_s7 + $0x8] sm:$0xff] (%p31_p3), %v203_v1  ;;  %v207_v3 = vld [vmem:[%s2265_s6 + $0x18] sm:$0xff] (%p31_p3)  ;;  %v209_v4 = vld [vmem:[%s2265_s6 + $0x20] sm:$0xff] (%p31_p3) }
  0x13   : > { %206 = vst [vmem:[%s184_s7 + $0x10] sm:$0xff] (%p31_p3), %v205_v2  ;;  %v211_v5 = vld [vmem:[%s2265_s6 + $0x28] sm:$0xff] (%p31_p3)  ;;  %208 = vst [vmem:[%s184_s7 + $0x18] sm:$0xff] (%p31_p3), %v207_v3  ;;  %v213_v6 = vld [vmem:[%s2265_s6 + $0x30] sm:$0xff] (%p31_p3) }
  0x14   : > { %210 = vst [vmem:[%s184_s7 + $0x20] sm:$0xff] (%p31_p3), %v209_v4  ;;  %212 = vst [vmem:[%s184_s7 + $0x28] sm:$0xff] (%p31_p3), %v211_v5  ;;  %v215_v7 = vld [vmem:[%s2265_s6 + $0x38] sm:$0xff] (%p31_p3)  ;;  %v217_v8 = vld [vmem:[%s2265_s6 + $0x80] sm:$0xff] (%p31_p3) }
  0x15   : > { %214 = vst [vmem:[%s184_s7 + $0x30] sm:$0xff] %v213_v6  ;;  %216 = vst [vmem:[%s184_s7 + $0x38] sm:$0xff] %v215_v7  ;;  %v219_v9 = vld [vmem:[%s2265_s6 + $0x88] sm:$0xff]  ;;  %v221_v10 = vld [vmem:[%s2265_s6 + $0x90] sm:$0xff] }
  0x16   : > { %218 = vst [vmem:[%s184_s7 + $0x40] sm:$0xff] %v217_v8  ;;  %v223_v11 = vld [vmem:[%s2265_s6 + $0x98] sm:$0xff]  ;;  %220 = vst [vmem:[%s184_s7 + $0x48] sm:$0xff] %v219_v9  ;;  %v225_v12 = vld [vmem:[%s2265_s6 + $0xa0] sm:$0xff] }
  0x17   : > { %222 = vst [vmem:[%s184_s7 + $0x50] sm:$0xff] %v221_v10  ;;  %224 = vst [vmem:[%s184_s7 + $0x58] sm:$0xff] %v223_v11  ;;  %v227_v13 = vld [vmem:[%s2265_s6 + $0xa8] sm:$0xff]  ;;  %v229_v14 = vld [vmem:[%s2265_s6 + $0xb0] sm:$0xff] }
  0x18   : > { %226 = vst [vmem:[%s184_s7 + $0x60] sm:$0xff] %v225_v12  ;;  %228 = vst [vmem:[%s184_s7 + $0x68] sm:$0xff] %v227_v13  ;;  %v231_v15 = vld [vmem:[%s2265_s6 + $0xb8] sm:$0xff] }
  0x19   : > { %230 = vst [vmem:[%s184_s7 + $0x70] sm:$0xff] %v229_v14  ;;  %232 = vst [vmem:[%s184_s7 + $0x78] sm:$0xff] %v231_v15 }
  0x1a PF: > { %p1590_p5 = scmp.ge.s32.totalorder %s2198_s20, 1  ;;  %p237_p6 = scmp.lt.s32.totalorder %s2198_s20, 3 }
  0x1c   : > { %p238_p7 = pnand %p1590_p5, %p237_p6 }
  0x1d   : > { %v276_v16 = vld [vmem:[%s2994_s1 + $0x8] sm:$0xff] (!%p238_p7)  ;;  %v278_v17 = vld [vmem:[%s2994_s1 + $0x18] sm:$0xff] (!%p238_p7)  ;;  %v275_v18 = vld [vmem:[%s2994_s1] sm:$0xff] (!%p238_p7)  ;;  %s244_s9 = sand.u32 (!%p238_p7), 1, %s2190_s18   ;;  %vm319_vm0 = vcmask (!%p238_p7), 130048   ;;  %vm809_vm1 = vcmask (!%p238_p7), 1046528  }
  0x1e   : > { %241 = sbr.rel (%p238_p7) target bundleno = 646 (0x286), region = 59  ;;  %v1743_v19 = vpack.c.bf16 (!%p238_p7), %v278_v17, %v276_v16  ;;  %v277_v20 = vld [vmem:[%s2994_s1 + $0x10] sm:$0xff] (!%p238_p7)  ;;  %v280_v21 = vld [vmem:[%s2994_s1 + $0x28] sm:$0xff] (!%p238_p7)  ;;  %v282_v22 = vld [vmem:[%s2994_s1 + $0x38] sm:$0xff] (!%p238_p7)  ;;  %s1591_s17 = sshll.u32 (!%p238_p7), %s244_s9, 7  ;;  %vm1041_vm2 = vcmask (!%p238_p7), 1045504  }
  0x1f   : > { %v1745_v23 = vpack.c.bf16 (!%p238_p7), %v277_v20, %v275_v18  ;;  %v1747_v24 = vpack.c.bf16 (!%p238_p7), %v282_v22, %v280_v21  ;;  %v279_v25 = vld [vmem:[%s2994_s1 + $0x20] sm:$0xff] (!%p238_p7)  ;;  %v281_v26 = vld [vmem:[%s2994_s1 + $0x30] sm:$0xff] (!%p238_p7)  ;;  %v284_v27 = vld [vmem:[%s2994_s1 + $0x48] sm:$0xff] (!%p238_p7)  ;;  %s2340_s7 = scalar_lea.vmem (!%p238_p7), [#allocation2], %s1591_s17  ;;  %p271_p8 = scmp.lt.s32.totalorder (!%p238_p7), %s1582_s21, 1 }
  0x20   : > { %1744 = vmatprep.subr.bf16.mxu0 (!%p238_p7), %v1743_v19  ;;  %1780 = vmatprep.subr.bf16.mxu1 (!%p238_p7), %v1743_v19  ;;  %v286_v28 = vld [vmem:[%s2994_s1 + $0x58] sm:$0xff] (!%p238_p7)  ;;  %v1749_v29 = vpack.c.bf16 (!%p238_p7), %v281_v26, %v279_v25  ;;  %v283_v31 = vld [vmem:[%s2994_s1 + $0x40] sm:$0xff] (!%p238_p7)  ;;  %v285_v32 = vld [vmem:[%s2994_s1 + $0x50] sm:$0xff] (!%p238_p7) }
  0x21   : > { %1746 = vmatpush1.bf16.msra.mxu0 (!%p238_p7), %v1745_v23  ;;  %1782 = vmatpush1.bf16.msra.mxu1 (!%p238_p7), %v1745_v23  ;;  %v1751_v30 = vpack.c.bf16 (!%p238_p7), %v286_v28, %v284_v27  ;;  %v288_v33 = vld [vmem:[%s2994_s1 + $0x68] sm:$0xff] (!%p238_p7)  ;;  %v290_v34 = vld [vmem:[%s2994_s1 + $0x78] sm:$0xff] (!%p238_p7)  ;;  %v1753_v35 = vpack.c.bf16 (!%p238_p7), %v285_v32, %v283_v31  ;;  %v287_v37 = vld [vmem:[%s2994_s1 + $0x60] sm:$0xff] (!%p238_p7) }
  0x22   : > { %1748 = vmatprep.subr.bf16.mxu0 (!%p238_p7), %v1747_v24  ;;  %1784 = vmatprep.subr.bf16.mxu1 (!%p238_p7), %v1747_v24  ;;  %v1755_v36 = vpack.c.bf16 (!%p238_p7), %v290_v34, %v288_v33  ;;  %v289_v38 = vld [vmem:[%s2994_s1 + $0x70] sm:$0xff] (!%p238_p7)  ;;  %v292_v39 = vld [vmem:[%s2994_s1 + $0x88] sm:$0xff] (!%p238_p7)  ;;  %v294_v40 = vld [vmem:[%s2994_s1 + $0x98] sm:$0xff] (!%p238_p7) }
  0x23   : > { %v1757_v41 = vpack.c.bf16 (!%p238_p7), %v289_v38, %v287_v37  ;;  %v312_v42 = vld [vmem:[%s2340_s7 + $0x8] sm:$0xff] (!%p238_p7)  ;;  %v1759_v44 = vpack.c.bf16 (!%p238_p7), %v294_v40, %v292_v39  ;;  %v291_v45 = vld [vmem:[%s2994_s1 + $0x80] sm:$0xff] (!%p238_p7)  ;;  %v293_v46 = vld [vmem:[%s2994_s1 + $0x90] sm:$0xff] (!%p238_p7) }
  0x24   : > { %v1598_v43 = vld [vmem:[%s2340_s7 + $0x48] sm:$0xff] (!%p238_p7)  ;;  %v298_v48 = vld [vmem:[%s2994_s1 + $0xb8] sm:$0xff] (!%p238_p7)  ;;  %1593 = vmatprep.mubr.msk.f32.mxu0 (!%p238_p7), %vm319_vm0, %v312_v42  ;;  %v1761_v49 = vpack.c.bf16 (!%p238_p7), %v293_v46, %v291_v45  ;;  %v295_v51 = vld [vmem:[%s2994_s1 + $0xa0] sm:$0xff] (!%p238_p7) }
  0x25   : > { %1750 = vmatpush1.bf16.msra.mxu0 %v1749_v29  ;;  %1786 = vmatpush1.bf16.msra.mxu1 %v1749_v29  ;;  %v296_v47 = vld [vmem:[%s2994_s1 + $0xa8] sm:$0xff]  ;;  %v297_v52 = vld [vmem:[%s2994_s1 + $0xb0] sm:$0xff]  ;;  %v302_v54 = vld [vmem:[%s2994_s1 + $0xd8] sm:$0xff]  ;;  %s3003_s21 = smov (!%p271_p8, %s1582_s21), 1 }
  0x26   : > { %1752 = vmatprep.subr.bf16.mxu0 %v1751_v30  ;;  %1788 = vmatprep.subr.bf16.mxu1 %v1751_v30  ;;  %v1763_v50 = vpack.c.bf16 %v298_v48, %v296_v47  ;;  %v300_v53 = vld [vmem:[%s2994_s1 + $0xc8] sm:$0xff]  ;;  %v1765_v55 = vpack.c.bf16 %v297_v52, %v295_v51  ;;  %v299_v57 = vld [vmem:[%s2994_s1 + $0xc0] sm:$0xff]  ;;  %v301_v58 = vld [vmem:[%s2994_s1 + $0xd0] sm:$0xff]  ;;  %s1592_s11 = sshll.u32 %s3003_s21, 3 }
  0x27   : > { %1605 = vmatprep.mubr.msk.f32.mxu1 %vm319_vm0, %v1598_v43  ;;  %v1767_v56 = vpack.c.bf16 %v302_v54, %v300_v53  ;;  %v304_v59 = vld [vmem:[%s2994_s1 + $0xe8] sm:$0xff]  ;;  %v306_v60 = vld [vmem:[%s2994_s1 + $0xf8] sm:$0xff]  ;;  %v1769_v61 = vpack.c.bf16 %v301_v58, %v299_v57  ;;  %v303_v63 = vld [vmem:[%s2994_s1 + $0xe0] sm:$0xff]  ;;  %s274_s14 = scalar_lea.vmem %s2998_s5, %s1592_s11 }
  0x28   : > { %v1771_v62 = vpack.c.bf16 %v306_v60, %v304_v59  ;;  %v305_v0 = vld [vmem:[%s2994_s1 + $0xf0] sm:$0xff]  ;;  %v308_v1 = vld [vmem:[%s2994_s1 + $0x108] sm:$0xff]  ;;  %v310_v2 = vld [vmem:[%s2994_s1 + $0x118] sm:$0xff] }
  0x29   : > { %1754 = vmatpush1.bf16.msra.mxu0 %v1753_v35  ;;  %1790 = vmatpush1.bf16.msra.mxu1 %v1753_v35  ;;  %v1773_v3 = vpack.c.bf16 %v305_v0, %v303_v63  ;;  %v1775_v4 = vpack.c.bf16 %v310_v2, %v308_v1  ;;  %v307_v5 = vld [vmem:[%s2994_s1 + $0x100] sm:$0xff]  ;;  %v309_v6 = vld [vmem:[%s2994_s1 + $0x110] sm:$0xff]  ;;  %v1611_v7 = vld [vmem:[%s2996_s3 + $0x108] sm:$0xff] }
  0x2a   : > { %1756 = vmatprep.subr.bf16.mxu0 %v1755_v36  ;;  %1792 = vmatprep.subr.bf16.mxu1 %v1755_v36  ;;  %v1613_v8 = vld [vmem:[%s2996_s3 + $0x118] sm:$0xff]  ;;  %v1777_v9 = vpack.c.bf16 %v309_v6, %v307_v5  ;;  %v1610_v11 = vld [vmem:[%s2996_s3 + $0x100] sm:$0xff]  ;;  %v1612_v12 = vld [vmem:[%s2996_s3 + $0x110] sm:$0xff] }
  0x2b   : > { %v1815_v10 = vpack.c.bf16 %v1613_v8, %v1611_v7  ;;  %v1615_v13 = vld [vmem:[%s2996_s3 + $0x128] sm:$0xff]  ;;  %v1617_v14 = vld [vmem:[%s2996_s3 + $0x138] sm:$0xff]  ;;  %v311_v15 = vld [vmem:[%s2340_s7] sm:$0xff]  ;;  %v1817_v19 = vpack.c.bf16 %v1612_v12, %v1610_v11 }
  0x2c   : > { %v1597_v16 = vld [vmem:[%s2340_s7 + $0x40] sm:$0xff]  ;;  %v314_v17 = vld [vmem:[%s2340_s7 + $0x18] sm:$0xff]  ;;  %v1819_v20 = vpack.c.bf16 %v1617_v14, %v1615_v13  ;;  %v1616_v22 = vld [vmem:[%s2996_s3 + $0x130] sm:$0xff] }
  0x2d   : > { %1758 = vmatpush1.bf16.msra.mxu0 %v1757_v41  ;;  %1794 = vmatpush1.bf16.msra.mxu1 %v1757_v41  ;;  %v1600_v18 = vld [vmem:[%s2340_s7 + $0x58] sm:$0xff]  ;;  %v1614_v21 = vld [vmem:[%s2996_s3 + $0x120] sm:$0xff]  ;;  %v1619_v23 = vld [vmem:[%s2996_s3 + $0x148] sm:$0xff] }
  0x2e   : > { %1760 = vmatprep.subr.bf16.mxu0 %v1759_v44  ;;  %1796 = vmatprep.subr.bf16.mxu1 %v1759_v44  ;;  %v1621_v24 = vld [vmem:[%s2996_s3 + $0x158] sm:$0xff]  ;;  %v313_v25 = vld [vmem:[%s2340_s7 + $0x10] sm:$0xff]  ;;  %v316_v27 = vld [vmem:[%s2340_s7 + $0x28] sm:$0xff]  ;;  %v1821_v29 = vpack.c.bf16 %v1616_v22, %v1614_v21 }
  0x2f   : > { %v1599_v26 = vld [vmem:[%s2340_s7 + $0x50] sm:$0xff]  ;;  %v1602_v28 = vld [vmem:[%s2340_s7 + $0x68] sm:$0xff]  ;;  %v1823_v30 = vpack.c.bf16 %v1621_v24, %v1619_v23  ;;  %v1618_v31 = vld [vmem:[%s2996_s3 + $0x140] sm:$0xff] }
  0x30   : > { %v1620_v32 = vld [vmem:[%s2996_s3 + $0x150] sm:$0xff]  ;;  %v1623_v33 = vld [vmem:[%s2996_s3 + $0x168] sm:$0xff]  ;;  %v1625_v34 = vld [vmem:[%s2996_s3 + $0x178] sm:$0xff] }
  0x31   : > { %1762 = vmatpush1.bf16.msra.mxu0 %v1761_v49  ;;  %1798 = vmatpush1.bf16.msra.mxu1 %v1761_v49  ;;  %v315_v35 = vld [vmem:[%s2340_s7 + $0x20] sm:$0xff]  ;;  %v318_v37 = vld [vmem:[%s2340_s7 + $0x38] sm:$0xff]  ;;  %v1825_v39 = vpack.c.bf16 %v1620_v32, %v1618_v31  ;;  %v1827_v40 = vpack.c.bf16 %v1625_v34, %v1623_v33  ;;  %v1624_v42 = vld [vmem:[%s2996_s3 + $0x170] sm:$0xff] }
  0x32   : > { %1764 = vmatprep.subr.bf16.mxu0 %v1763_v50  ;;  %1800 = vmatprep.subr.bf16.mxu1 %v1763_v50  ;;  %v1601_v36 = vld [vmem:[%s2340_s7 + $0x60] sm:$0xff]  ;;  %v1604_v38 = vld [vmem:[%s2340_s7 + $0x78] sm:$0xff]  ;;  %v1627_v43 = vld [vmem:[%s2996_s3 + $0x188] sm:$0xff] }
  0x33   : > { %v1622_v41 = vld [vmem:[%s2996_s3 + $0x160] sm:$0xff]  ;;  %v1629_v44 = vld [vmem:[%s2996_s3 + $0x198] sm:$0xff]  ;;  %v317_v45 = vld [vmem:[%s2340_s7 + $0x30] sm:$0xff] }
  0x34   : > { %v1603_v46 = vld [vmem:[%s2340_s7 + $0x70] sm:$0xff]  ;;  %v1829_v47 = vpack.c.bf16 %v1624_v42, %v1622_v41  ;;  %v1831_v48 = vpack.c.bf16 %v1629_v44, %v1627_v43  ;;  %v1626_v49 = vld [vmem:[%s2996_s3 + $0x180] sm:$0xff]  ;;  %v1631_v52 = vld [vmem:[%s2996_s3 + $0x1a8] sm:$0xff] }
  0x35   : > { %1766 = vmatpush1.bf16.msra.mxu0 %v1765_v55  ;;  %1802 = vmatpush1.bf16.msra.mxu1 %v1765_v55  ;;  %v1628_v50 = vld [vmem:[%s2996_s3 + $0x190] sm:$0xff]  ;;  %v1633_v53 = vld [vmem:[%s2996_s3 + $0x1b8] sm:$0xff]  ;;  %v1630_v55 = vld [vmem:[%s2996_s3 + $0x1a0] sm:$0xff] }
  0x36   : > { %1768 = vmatprep.subr.bf16.mxu0 %v1767_v56  ;;  %1804 = vmatprep.subr.bf16.mxu1 %v1767_v56  ;;  %v1833_v51 = vpack.c.bf16 %v1628_v50, %v1626_v49  ;;  %v1835_v54 = vpack.c.bf16 %v1633_v53, %v1631_v52  ;;  %v1632_v56 = vld [vmem:[%s2996_s3 + $0x1b0] sm:$0xff]  ;;  %v1635_v58 = vld [vmem:[%s2996_s3 + $0x1c8] sm:$0xff]  ;;  %v1637_v59 = vld [vmem:[%s2996_s3 + $0x1d8] sm:$0xff] }
  0x37   : > { %v1837_v57 = vpack.c.bf16 %v1632_v56, %v1630_v55  ;;  %v1839_v60 = vpack.c.bf16 %v1637_v59, %v1635_v58  ;;  %v1639_v0 = vld [vmem:[%s2996_s3 + $0x1e8] sm:$0xff]  ;;  %v1641_v1 = vld [vmem:[%s2996_s3 + $0x1f8] sm:$0xff]  ;;  %v564_v43 = vld [vmem:[%s2996_s3 + $0x30] sm:$0xff] }
  0x38   : > { %v1843_v2 = vpack.c.bf16 %v1641_v1, %v1639_v0  ;;  %v559_v6 = vld [vmem:[%s2996_s3 + $0x8] sm:$0xff]  ;;  %v561_v7 = vld [vmem:[%s2996_s3 + $0x18] sm:$0xff] }
  0x39   : > { %1770 = vmatpush1.bf16.msra.mxu0 %v1769_v61  ;;  %1806 = vmatpush1.bf16.msra.mxu1 %v1769_v61  ;;  %v1634_v61 = vld [vmem:[%s2996_s3 + $0x1c0] sm:$0xff]  ;;  %v1847_v8 = vpack.c.bf16 %v561_v7, %v559_v6  ;;  %v563_v34 = vld [vmem:[%s2996_s3 + $0x28] sm:$0xff] }
  0x3a   : > { %1772 = vmatprep.subr.bf16.mxu0 %v1771_v62  ;;  %1808 = vmatprep.subr.bf16.mxu1 %v1771_v62  ;;  %v1636_v62 = vld [vmem:[%s2996_s3 + $0x1d0] sm:$0xff]  ;;  %v567_v44 = vld [vmem:[%s2996_s3 + $0x48] sm:$0xff] }
  0x3b   : > { %v1841_v63 = vpack.c.bf16 %v1636_v62, %v1634_v61  ;;  %v566_v61 = vld [vmem:[%s2996_s3 + $0x40] sm:$0xff]  ;;  %v568_v62 = vld [vmem:[%s2996_s3 + $0x50] sm:$0xff]  ;;  %v571_v1 = vld [vmem:[%s2996_s3 + $0x68] sm:$0xff] }
  0x3c   : > { %v1857_v6 = vpack.c.bf16 %v568_v62, %v566_v61  ;;  %v1650_v62 = vld [vmem:[%s2996_s3 + $0x240] sm:$0xff] }
  0x3d   : > { %1774 = vmatpush1.bf16.msra.mxu0 %v1773_v3  ;;  %1810 = vmatpush1.bf16.msra.mxu1 %v1773_v3  ;;  %v1638_v3 = vld [vmem:[%s2996_s3 + $0x1e0] sm:$0xff] }
  0x3e   : > { %1776 = vmatprep.subr.bf16.mxu0 %v1775_v4  ;;  %1812 = vmatprep.subr.bf16.mxu1 %v1775_v4  ;;  %v1640_v4 = vld [vmem:[%s2996_s3 + $0x1f0] sm:$0xff] }
  0x3f   : > { %v1845_v5 = vpack.c.bf16 %v1640_v4, %v1638_v3 }
  0x41   : > { %1778 = vmatpush1.bf16.msra.mxu0 %v1777_v9  ;;  %1814 = vmatpush1.bf16.msra.mxu1 %v1777_v9  ;;  %v2200_v9 = vmov 0.0  }
  0x42   : > { %1816 = vmatprep.subr.bf16.mxu0 %v1815_v10  ;;  %1976 = vmatprep.subr.bf16.mxu1 %v1815_v10 }
  0x44   : > { %397 = vmatmul.mubr.f32.vlgmr.msra.gmra.mrb[0].mxu0 %v311_v15  ;;  %507 = vmatmul.mubr.f32.vlgmr.msra.gmra.mrb[0].mxu1 %v1597_v16  ;;  %v1609_v16 = vld [vmem:[%s2995_s2] ss:$0 sm:$0xff] }
  0x45   : > { %1594 = vmatprep.mubr.msk.f32.mxu0 %vm319_vm0, %v314_v17  ;;  %1606 = vmatprep.mubr.msk.f32.mxu1 %vm319_vm0, %v1600_v18 }
  0x46   : > { %1818 = vmatpush1.bf16.msra.mxu0 %v1817_v19  ;;  %1978 = vmatpush1.bf16.msra.mxu1 %v1817_v19 }
  0x47   : > { %1820 = vmatprep.subr.bf16.mxu0 %v1819_v20  ;;  %1980 = vmatprep.subr.bf16.mxu1 %v1819_v20 }
  0x48   : > { %403 = vmatmul.mubr.f32.gmra.mrb[2].mxu0 %v313_v25  ;;  %513 = vmatmul.mubr.f32.gmra.mrb[2].mxu1 %v1599_v26 }
  0x49   : > { %1595 = vmatprep.mubr.msk.f32.mxu0 %vm319_vm0, %v316_v27  ;;  %1607 = vmatprep.mubr.msk.f32.mxu1 %vm319_vm0, %v1602_v28  ;;  %v558_v28 = vld [vmem:[%s2996_s3] sm:$0xff] }
  0x4a   : > { %1822 = vmatpush1.bf16.msra.mxu0 %v1821_v29  ;;  %1982 = vmatpush1.bf16.msra.mxu1 %v1821_v29  ;;  %v560_v29 = vld [vmem:[%s2996_s3 + $0x10] sm:$0xff] }
  0x4b   : > { %1824 = vmatprep.subr.bf16.mxu0 %v1823_v30  ;;  %1984 = vmatprep.subr.bf16.mxu1 %v1823_v30 }
  0x4c   : > { %409 = vmatmul.mubr.f32.gmra.mrb[4].mxu0 %v315_v35  ;;  %519 = vmatmul.mubr.f32.gmra.mrb[4].mxu1 %v1601_v36  ;;  %v565_v35 = vld [vmem:[%s2996_s3 + $0x38] sm:$0xff] }
  0x4d   : > { %1596 = vmatprep.mubr.msk.f32.mxu0 %vm319_vm0, %v318_v37  ;;  %1608 = vmatprep.mubr.msk.f32.mxu1 %vm319_vm0, %v1604_v38  ;;  %v1849_v38 = vpack.c.bf16 %v560_v29, %v558_v28  ;;  %v1851_v42 = vpack.c.bf16 %v565_v35, %v563_v34  ;;  %v578_v28 = vld [vmem:[%s2996_s3 + $0xa0] sm:$0xff]  ;;  %v580_v29 = vld [vmem:[%s2996_s3 + $0xb0] sm:$0xff] }
  0x4e   : > { %1826 = vmatpush1.bf16.msra.mxu0 %v1825_v39  ;;  %1986 = vmatpush1.bf16.msra.mxu1 %v1825_v39  ;;  %v562_v39 = vld [vmem:[%s2996_s3 + $0x20] sm:$0xff] }
  0x4f   : > { %1828 = vmatprep.subr.bf16.mxu0 %v1827_v40  ;;  %1988 = vmatprep.subr.bf16.mxu1 %v1827_v40  ;;  %v582_v35 = vld [vmem:[%s2996_s3 + $0xc0] sm:$0xff] }
  0x50   : > { %415 = vmatmul.mubr.f32.gmra.mrb[6].mxu0 %v317_v45  ;;  %525 = vmatmul.mubr.f32.gmra.mrb[6].mxu1 %v1603_v46  ;;  %v569_v45 = vld [vmem:[%s2996_s3 + $0x58] sm:$0xff] }
  0x51   : > { %687 = vmatprep.mubr.f32.mxu0 %v2200_v9  ;;  %1190 = vmatprep.mubr.f32.mxu1 %v2200_v9  ;;  %v1855_v58 = vpack.c.bf16 %v569_v45, %v567_v44  ;;  %v1643_v44 = vld [vmem:[%s2996_s3 + $0x208] sm:$0xff]  ;;  %v1645_v45 = vld [vmem:[%s2996_s3 + $0x218] sm:$0xff] }
  0x52   : > { %1830 = vmatpush1.bf16.msra.mxu0 %v1829_v47  ;;  %1990 = vmatpush1.bf16.msra.mxu1 %v1829_v47 }
  0x53   : > { %1832 = vmatprep.subr.bf16.mxu0 %v1831_v48  ;;  %1992 = vmatprep.subr.bf16.mxu1 %v1831_v48 }
  0x56   : > { %1834 = vmatpush1.bf16.msra.mxu0 %v1833_v51  ;;  %1994 = vmatpush1.bf16.msra.mxu1 %v1833_v51 }
  0x57   : > { %1836 = vmatprep.subr.bf16.mxu0 %v1835_v54  ;;  %1996 = vmatprep.subr.bf16.mxu1 %v1835_v54 }
  0x5a   : > { %1838 = vmatpush1.bf16.msra.mxu0 %v1837_v57  ;;  %1998 = vmatpush1.bf16.msra.mxu1 %v1837_v57  ;;  %v1853_v57 = vpack.c.bf16 %v564_v43, %v562_v39  ;;  %v588_v43 = vld [vmem:[%s2996_s3 + $0xf0] sm:$0xff] }
  0x5b   : > { %1840 = vmatprep.subr.bf16.mxu0 %v1839_v60  ;;  %2000 = vmatprep.subr.bf16.mxu1 %v1839_v60 }
  0x5e   : > { %1842 = vmatpush1.bf16.msra.mxu0 %v1841_v63  ;;  %2002 = vmatpush1.bf16.msra.mxu1 %v1841_v63 }
  0x5f   : > { %1844 = vmatprep.subr.bf16.mxu0 %v1843_v2  ;;  %2004 = vmatprep.subr.bf16.mxu1 %v1843_v2  ;;  %v573_v2 = vld [vmem:[%s2996_s3 + $0x78] sm:$0xff] }
  0x62   : > { %1846 = vmatpush1.bf16.msra.mxu0 %v1845_v5  ;;  %2006 = vmatpush1.bf16.msra.mxu1 %v1845_v5 }
  0x63   : > { %1848 = vmatprep.subr.bf16.mxu0 %v1847_v8  ;;  %2008 = vmatprep.subr.bf16.mxu1 %v1847_v8  ;;  %v1859_v8 = vpack.c.bf16 %v573_v2, %v571_v1  ;;  %v1657_v1 = vld [vmem:[%s2996_s3 + $0x278] sm:$0xff] }
 0x117   : > { %v398_v10 = vpop.f32.mrb[0].mxu0  ;;  %v508_v11 = vpop.f32.mrb[0].mxu1 }
 0x118   : > { %v531_v12 = vmax.f32 %v398_v10, %v508_v11  ;;  %v400_v13 = vpop.f32.mrb[1].mxu0  ;;  %v510_v14 = vpop.f32.mrb[1].mxu1  ;;  %v570_v10 = vld [vmem:[%s2996_s3 + $0x60] sm:$0xff]  ;;  %v572_v11 = vld [vmem:[%s2996_s3 + $0x70] sm:$0xff] }
 0x119   : > { %v532_v15 = vmax.f32 %v400_v13, %v510_v14  ;;  %v575_v14 = vld [vmem:[%s2996_s3 + $0x88] sm:$0xff] }
 0x11b   : > { %v539_v17 = vmax.f32 %v531_v12, %v532_v15  ;;  %v404_v18 = vpop.f32.mrb[2].mxu0  ;;  %v514_v19 = vpop.f32.mrb[2].mxu1  ;;  %v577_v15 = vld [vmem:[%s2996_s3 + $0x98] sm:$0xff] }
 0x11c   : > { %v533_v20 = vmax.f32 %v404_v18, %v514_v19  ;;  %v406_v21 = vpop.f32.mrb[3].mxu0  ;;  %v516_v22 = vpop.f32.mrb[3].mxu1  ;;  %v1861_v18 = vpack.c.bf16 %v572_v11, %v570_v10  ;;  %v1863_v19 = vpack.c.bf16 %v577_v15, %v575_v14  ;;  %v1660_v11 = vld [vmem:[%s2996_s3 + $0x290] sm:$0xff]  ;;  %v1665_v14 = vld [vmem:[%s2996_s3 + $0x2b8] sm:$0xff] }
 0x11d   : > { %v550_v23 = vadd.f32 %v1609_v16, %v539_v17  ;;  %v534_v24 = vmax.f32 %v406_v21, %v516_v22  ;;  %v576_v21 = vld [vmem:[%s2996_s3 + $0x90] sm:$0xff] }
 0x11f   : > { %v540_v25 = vmax.f32 %v533_v20, %v534_v24  ;;  %v410_v26 = vpop.f32.mrb[4].mxu0  ;;  %v520_v27 = vpop.f32.mrb[4].mxu1  ;;  %v2533_v30 = vmax.f32 %v550_v23, 0.0  ;;  %v574_v20 = vld [vmem:[%s2996_s3 + $0x80] sm:$0xff]  ;;  %v579_v24 = vld [vmem:[%s2996_s3 + $0xa8] sm:$0xff] }
 0x120   : > { %v535_v31 = vmax.f32 %v410_v26, %v520_v27  ;;  %v412_v32 = vpop.f32.mrb[5].mxu0  ;;  %v522_v33 = vpop.f32.mrb[5].mxu1  ;;  %v1865_v26 = vpack.c.bf16 %v576_v21, %v574_v20  ;;  %v1669_v20 = vld [vmem:[%s2996_s3 + $0x2d8] sm:$0xff] }
 0x121   : > { %v551_v36 = vadd.f32 %v1609_v16, %v540_v25  ;;  %v536_v37 = vmax.f32 %v412_v32, %v522_v33  ;;  %v810_v48 = vrot.slane %v2533_v30, 1  ;;  %v1042_v49 = vrot.slane %v2533_v30, 2  ;;  %v581_v25 = vld [vmem:[%s2996_s3 + $0xb8] sm:$0xff] }
 0x122   : > { %v1867_v27 = vpack.c.bf16 %v581_v25, %v579_v24  ;;  %v585_v32 = vld [vmem:[%s2996_s3 + $0xd8] sm:$0xff]  ;;  %v1869_v33 = vpack.c.bf16 %v580_v29, %v578_v28  ;;  %v1666_v25 = vld [vmem:[%s2996_s3 + $0x2c0] sm:$0xff] }
 0x123   : > { %v2544_v40 = vmax.f32 %v551_v36, 0.0  ;;  %v541_v41 = vmax.f32 %v535_v31, %v536_v37  ;;  %v416_v46 = vpop.f32.mrb[6].mxu0  ;;  %v526_v47 = vpop.f32.mrb[6].mxu1  ;;  %v583_v31 = vld [vmem:[%s2996_s3 + $0xc8] sm:$0xff]  ;;  %v584_v36 = vld [vmem:[%s2996_s3 + $0xd0] sm:$0xff]  ;;  %v1673_v28 = vld [vmem:[%s2996_s3 + $0x2f8] sm:$0xff] }
 0x124   : > { %v537_v50 = vmax.f32 %v416_v46, %v526_v47  ;;  %v418_v51 = vpop.f32.mrb[7].mxu0  ;;  %v528_v52 = vpop.f32.mrb[7].mxu1  ;;  %v1871_v34 = vpack.c.bf16 %v585_v32, %v583_v31  ;;  %v587_v37 = vld [vmem:[%s2996_s3 + $0xe8] sm:$0xff]  ;;  %v1873_v39 = vpack.c.bf16 %v584_v36, %v582_v35  ;;  %v1879_v47 = vpack.c.bf16 %v1645_v45, %v1643_v44  ;;  %v1670_v32 = vld [vmem:[%s2996_s3 + $0x2e0] sm:$0xff]  ;;  %v1677_v35 = vld [vmem:[%s2996_s3 + $0x318] sm:$0xff] }
 0x125   : > { %v552_v53 = vadd.f32 %v1609_v16, %v541_v41  ;;  %688 = vmatmul.mubr.f32.vlgmr.msra.gmra.mrb[8].mxu0 %v2544_v40  ;;  %v811_v54 = vrot.slane %v2544_v40, 1  ;;  %v538_v55 = vmax.f32 %v418_v51, %v528_v52  ;;  %v1043_v56 = vrot.slane %v2544_v40, 2  ;;  %v1649_v51 = vld [vmem:[%s2996_s3 + $0x238] sm:$0xff]  ;;  %v1678_v45 = vld [vmem:[%s2996_s3 + $0x320] sm:$0xff] }
 0x126   : > { %1850 = vmatpush1.bf16.msra.mxu0 %v1849_v38  ;;  %693 = vmatprep.mubr.f32.mxu0 %v2200_v9 }
 0x127   : > { %v2561_v59 = vmax.f32 %v552_v53, 0.0  ;;  %1852 = vmatprep.subr.bf16.mxu0 %v1851_v42  ;;  %v2564_v60 = vsel %vm809_vm1, %v810_v48, %v811_v54  ;;  %v542_v63 = vmax.f32 %v537_v50, %v538_v55  ;;  %v2573_v0 = vsel %vm1041_vm2, %v1042_v49, %v1043_v56  ;;  %v1642_v48 = vld [vmem:[%s2996_s3 + $0x200] sm:$0xff]  ;;  %v1644_v49 = vld [vmem:[%s2996_s3 + $0x210] sm:$0xff]  ;;  %v1647_v50 = vld [vmem:[%s2996_s3 + $0x228] sm:$0xff] }
 0x128   : > { %1191 = vmatmul.mubr.f32.vlgmr.msra.gmra.mrb[8].mxu1 %v2564_v60  ;;  %v1881_v52 = vpack.c.bf16 %v1644_v49, %v1642_v48  ;;  %v1883_v53 = vpack.c.bf16 %v1649_v51, %v1647_v50  ;;  %v1648_v55 = vld [vmem:[%s2996_s3 + $0x230] sm:$0xff]  ;;  %v1685_v48 = vld [vmem:[%s2996_s3 + $0x358] sm:$0xff]  ;;  %v1682_v51 = vld [vmem:[%s2996_s3 + $0x340] sm:$0xff] }
 0x129   : > { %2010 = vmatpush1.bf16.msra.mxu1 %v1849_v38  ;;  %1196 = vmatprep.mubr.f32.mxu1 %v2200_v9  ;;  %v813_v3 = vrot.slane %v2561_v59, 1  ;;  %v553_v4 = vadd.f32 %v1609_v16, %v542_v63  ;;  %v1045_v5 = vrot.slane %v2561_v59, 2  ;;  %v589_v38 = vld [vmem:[%s2996_s3 + $0xf8] sm:$0xff]  ;;  %v1652_v63 = vld [vmem:[%s2996_s3 + $0x250] sm:$0xff] }
 0x12a   : > { %1854 = vmatpush1.bf16.msra.mxu0 %v1853_v57  ;;  %2012 = vmatprep.subr.bf16.mxu1 %v1851_v42  ;;  %v1875_v41 = vpack.c.bf16 %v589_v38, %v587_v37  ;;  %v586_v42 = vld [vmem:[%s2996_s3 + $0xe0] sm:$0xff]  ;;  %v1889_v2 = vpack.c.bf16 %v1652_v63, %v1650_v62 }
 0x12b   : > { %1856 = vmatprep.subr.bf16.mxu0 %v1855_v58  ;;  %v2586_v7 = vsel %vm809_vm1, %v811_v54, %v813_v3  ;;  %v557_v12 = vmax.f32 %v553_v4, 0.0  ;;  %694 = vmatmul.mubr.f32.gmra.mrb[10].mxu0 %v2561_v59  ;;  %v2596_v13 = vsel %vm1041_vm2, %v1043_v56, %v1045_v5  ;;  %v1877_v46 = vpack.c.bf16 %v588_v43, %v586_v42  ;;  %v1646_v54 = vld [vmem:[%s2996_s3 + $0x220] sm:$0xff]  ;;  %v1651_v56 = vld [vmem:[%s2996_s3 + $0x248] sm:$0xff]  ;;  %v1681_v42 = vld [vmem:[%s2996_s3 + $0x338] sm:$0xff] }
 0x12c   : > { %1197 = vmatmul.mubr.f32.gmra.mrb[10].mxu1 %v2586_v7  ;;  %762 = vmatprep.mubr.f32.mxu0 %v2200_v9  ;;  %v1654_v4 = vld [vmem:[%s2996_s3 + $0x260] sm:$0xff] }
 0x12d   : > { %2014 = vmatpush1.bf16.msra.mxu1 %v1853_v57  ;;  %1265 = vmatprep.mubr.f32.mxu1 %v2200_v9  ;;  %v928_v16 = vrot.slane %v557_v12, 1  ;;  %v1430_v17 = vrot.slane %v557_v12, 2  ;;  %v1653_v57 = vld [vmem:[%s2996_s3 + $0x258] sm:$0xff]  ;;  %v1663_v12 = vld [vmem:[%s2996_s3 + $0x2a8] sm:$0xff]  ;;  %v1674_v38 = vld [vmem:[%s2996_s3 + $0x300] sm:$0xff] }
 0x12e   : > { %1858 = vmatpush1.bf16.msra.mxu0 %v1857_v6  ;;  %2016 = vmatprep.subr.bf16.mxu1 %v1855_v58  ;;  %v1885_v58 = vpack.c.bf16 %v1648_v55, %v1646_v54  ;;  %v1887_v61 = vpack.c.bf16 %v1653_v57, %v1651_v56  ;;  %v1686_v56 = vld [vmem:[%s2996_s3 + $0x360] sm:$0xff]  ;;  %v1688_v57 = vld [vmem:[%s2996_s3 + $0x370] sm:$0xff] }
 0x12f   : > { %1860 = vmatprep.subr.bf16.mxu0 %v1859_v8  ;;  %v2614_v22 = vsel %vm809_vm1, %v813_v3, %v928_v16  ;;  %v2617_v23 = vsel %vm1041_vm2, %v1045_v5, %v1430_v17  ;;  %v1656_v5 = vld [vmem:[%s2996_s3 + $0x270] sm:$0xff]  ;;  %v1899_v16 = vpack.c.bf16 %v1665_v14, %v1663_v12  ;;  %v1662_v17 = vld [vmem:[%s2996_s3 + $0x2a0] sm:$0xff]  ;;  %v1925_v62 = vpack.c.bf16 %v1688_v57, %v1686_v56 }
 0x130   : > { %v1698_v12 = vld [vmem:[%s2996_s3 + $0x3c0] sm:$0xff]  ;;  %v1700_v14 = vld [vmem:[%s2996_s3 + $0x3d0] sm:$0xff] }
 0x131   : > { %2018 = vmatpush1.bf16.msra.mxu1 %v1857_v6  ;;  %v1661_v6 = vld [vmem:[%s2996_s3 + $0x298] sm:$0xff]  ;;  %v1726_v56 = vld [vmem:[%s2996_s3 + $0x4a0] sm:$0xff]  ;;  %v1728_v57 = vld [vmem:[%s2996_s3 + $0x4b0] sm:$0xff] }
 0x132   : > { %1862 = vmatpush1.bf16.msra.mxu0 %v1861_v18  ;;  %2020 = vmatprep.subr.bf16.mxu1 %v1859_v8  ;;  %v1893_v8 = vpack.c.bf16 %v1656_v5, %v1654_v4 }
 0x133   : > { %1864 = vmatprep.subr.bf16.mxu0 %v1863_v19 }
 0x135   : > { %2022 = vmatpush1.bf16.msra.mxu1 %v1861_v18  ;;  %v1664_v18 = vld [vmem:[%s2996_s3 + $0x2b0] sm:$0xff] }
 0x136   : > { %1866 = vmatpush1.bf16.msra.mxu0 %v1865_v26  ;;  %2024 = vmatprep.subr.bf16.mxu1 %v1863_v19  ;;  %v1667_v19 = vld [vmem:[%s2996_s3 + $0x2c8] sm:$0xff]  ;;  %v1901_v21 = vpack.c.bf16 %v1664_v18, %v1662_v17  ;;  %v1937_v17 = vpack.c.bf16 %v1700_v14, %v1698_v12 }
 0x137   : > { %1868 = vmatprep.subr.bf16.mxu0 %v1867_v27  ;;  %v1903_v24 = vpack.c.bf16 %v1669_v20, %v1667_v19  ;;  %v1702_v19 = vld [vmem:[%s2996_s3 + $0x3e0] sm:$0xff]  ;;  %v1704_v20 = vld [vmem:[%s2996_s3 + $0x3f0] sm:$0xff] }
 0x139   : > { %2026 = vmatpush1.bf16.msra.mxu1 %v1865_v26  ;;  %v1668_v26 = vld [vmem:[%s2996_s3 + $0x2d0] sm:$0xff] }
 0x13a   : > { %1870 = vmatpush1.bf16.msra.mxu0 %v1869_v33  ;;  %2028 = vmatprep.subr.bf16.mxu1 %v1867_v27  ;;  %v1671_v27 = vld [vmem:[%s2996_s3 + $0x2e8] sm:$0xff]  ;;  %v1905_v29 = vpack.c.bf16 %v1668_v26, %v1666_v25  ;;  %v1941_v25 = vpack.c.bf16 %v1704_v20, %v1702_v19 }
 0x13b   : > { %1872 = vmatprep.subr.bf16.mxu0 %v1871_v34  ;;  %v1907_v31 = vpack.c.bf16 %v1673_v28, %v1671_v27  ;;  %v1706_v27 = vld [vmem:[%s2996_s3 + $0x400] sm:$0xff]  ;;  %v1708_v28 = vld [vmem:[%s2996_s3 + $0x410] sm:$0xff] }
 0x13d   : > { %2030 = vmatpush1.bf16.msra.mxu1 %v1869_v33  ;;  %v1672_v33 = vld [vmem:[%s2996_s3 + $0x2f0] sm:$0xff] }
 0x13e   : > { %1874 = vmatpush1.bf16.msra.mxu0 %v1873_v39  ;;  %2032 = vmatprep.subr.bf16.mxu1 %v1871_v34  ;;  %v1675_v34 = vld [vmem:[%s2996_s3 + $0x308] sm:$0xff]  ;;  %v1909_v36 = vpack.c.bf16 %v1672_v33, %v1670_v32  ;;  %v1945_v32 = vpack.c.bf16 %v1708_v28, %v1706_v27 }
 0x13f   : > { %1876 = vmatprep.subr.bf16.mxu0 %v1875_v41  ;;  %v1911_v37 = vpack.c.bf16 %v1677_v35, %v1675_v34  ;;  %v1710_v34 = vld [vmem:[%s2996_s3 + $0x420] sm:$0xff]  ;;  %v1712_v35 = vld [vmem:[%s2996_s3 + $0x430] sm:$0xff] }
 0x141   : > { %2034 = vmatpush1.bf16.msra.mxu1 %v1873_v39  ;;  %v1676_v39 = vld [vmem:[%s2996_s3 + $0x310] sm:$0xff] }
 0x142   : > { %1878 = vmatpush1.bf16.msra.mxu0 %v1877_v46  ;;  %2036 = vmatprep.subr.bf16.mxu1 %v1875_v41  ;;  %v1679_v41 = vld [vmem:[%s2996_s3 + $0x328] sm:$0xff]  ;;  %v1913_v43 = vpack.c.bf16 %v1676_v39, %v1674_v38  ;;  %v1949_v38 = vpack.c.bf16 %v1712_v35, %v1710_v34 }
 0x143   : > { %1880 = vmatprep.subr.bf16.mxu0 %v1879_v47  ;;  %v1915_v44 = vpack.c.bf16 %v1681_v42, %v1679_v41  ;;  %v1714_v41 = vld [vmem:[%s2996_s3 + $0x440] sm:$0xff]  ;;  %v1716_v42 = vld [vmem:[%s2996_s3 + $0x450] sm:$0xff] }
 0x145   : > { %763 = vmatmul.mubr.f32.vlgmr.msra.gmra.mrb[8].mxu0 %v2533_v30  ;;  %2038 = vmatpush1.bf16.msra.mxu1 %v1877_v46  ;;  %v1655_v30 = vld [vmem:[%s2996_s3 + $0x268] sm:$0xff]  ;;  %v1680_v46 = vld [vmem:[%s2996_s3 + $0x330] sm:$0xff] }
 0x146   : > { %1882 = vmatpush1.bf16.msra.mxu0 %v1881_v52  ;;  %768 = vmatprep.mubr.f32.mxu0 %v2200_v9  ;;  %v1891_v3 = vpack.c.bf16 %v1657_v1, %v1655_v30  ;;  %v1917_v49 = vpack.c.bf16 %v1680_v46, %v1678_v45  ;;  %v1690_v30 = vld [vmem:[%s2996_s3 + $0x380] sm:$0xff]  ;;  %v1692_v1 = vld [vmem:[%s2996_s3 + $0x390] sm:$0xff] }
 0x147   : > { %2040 = vmatprep.subr.bf16.mxu1 %v1879_v47  ;;  %1884 = vmatprep.subr.bf16.mxu0 %v1883_v53  ;;  %v1683_v47 = vld [vmem:[%s2996_s3 + $0x348] sm:$0xff]  ;;  %v1929_v4 = vpack.c.bf16 %v1692_v1, %v1690_v30  ;;  %v1718_v46 = vld [vmem:[%s2996_s3 + $0x460] sm:$0xff]  ;;  %v1732_v1 = vld [vmem:[%s2996_s3 + $0x4d0] sm:$0xff] }
 0x148   : > { %1266 = vmatmul.mubr.f32.vlgmr.msra.gmra.mrb[8].mxu1 %v2544_v40  ;;  %v1919_v50 = vpack.c.bf16 %v1685_v48, %v1683_v47  ;;  %v1720_v47 = vld [vmem:[%s2996_s3 + $0x470] sm:$0xff]  ;;  %v1725_v48 = vld [vmem:[%s2996_s3 + $0x498] sm:$0xff]  ;;  %v1730_v30 = vld [vmem:[%s2996_s3 + $0x4c0] sm:$0xff] }
 0x149   : > { %769 = vmatmul.mubr.f32.gmra.mrb[12].mxu0 %v2544_v40  ;;  %2042 = vmatpush1.bf16.msra.mxu1 %v1881_v52  ;;  %v1659_v40 = vld [vmem:[%s2996_s3 + $0x288] sm:$0xff]  ;;  %v1684_v52 = vld [vmem:[%s2996_s3 + $0x350] sm:$0xff] }
 0x14a   : > { %1886 = vmatpush1.bf16.msra.mxu0 %v1885_v58  ;;  %1271 = vmatprep.mubr.f32.mxu1 %v2200_v9  ;;  %v1895_v10 = vpack.c.bf16 %v1661_v6, %v1659_v40  ;;  %v1921_v54 = vpack.c.bf16 %v1684_v52, %v1682_v51  ;;  %v1694_v40 = vld [vmem:[%s2996_s3 + $0x3a0] sm:$0xff]  ;;  %v1696_v6 = vld [vmem:[%s2996_s3 + $0x3b0] sm:$0xff] }
 0x14b   : > { %2044 = vmatprep.subr.bf16.mxu1 %v1883_v53  ;;  %1888 = vmatprep.subr.bf16.mxu0 %v1887_v61  ;;  %v1689_v53 = vld [vmem:[%s2996_s3 + $0x378] sm:$0xff]  ;;  %v1722_v51 = vld [vmem:[%s2996_s3 + $0x480] sm:$0xff]  ;;  %v1724_v52 = vld [vmem:[%s2996_s3 + $0x490] sm:$0xff] }
 0x14c   : > { %1272 = vmatmul.mubr.f32.gmra.mrb[12].mxu1 %v2561_v59  ;;  %881 = vmatprep.mubr.f32.mxu0 %v2200_v9  ;;  %v1658_v59 = vld [vmem:[%s2996_s3 + $0x280] sm:$0xff] }
 0x14d   : > { %2046 = vmatpush1.bf16.msra.mxu1 %v1885_v58  ;;  %1340 = vmatprep.mubr.f32.mxu1 %v2200_v9  ;;  %v1897_v15 = vpack.c.bf16 %v1660_v11, %v1658_v59  ;;  %v1691_v58 = vld [vmem:[%s2996_s3 + $0x388] sm:$0xff]  ;;  %v1933_v59 = vpack.c.bf16 %v1696_v6, %v1694_v40  ;;  %v1734_v40 = vld [vmem:[%s2996_s3 + $0x4e0] sm:$0xff]  ;;  %v1736_v6 = vld [vmem:[%s2996_s3 + $0x4f0] sm:$0xff] }
 0x14e   : > { %1890 = vmatpush1.bf16.msra.mxu0 %v1889_v2  ;;  %2048 = vmatprep.subr.bf16.mxu1 %v1887_v61  ;;  %v1693_v61 = vld [vmem:[%s2996_s3 + $0x398] sm:$0xff] }
 0x14f   : > { %1892 = vmatprep.subr.bf16.mxu0 %v1891_v3  ;;  %v1927_v63 = vpack.c.bf16 %v1693_v61, %v1691_v58  ;;  %v1731_v58 = vld [vmem:[%s2996_s3 + $0x4c8] sm:$0xff]  ;;  %v1733_v61 = vld [vmem:[%s2996_s3 + $0x4d8] sm:$0xff] }
 0x151   : > { %2050 = vmatpush1.bf16.msra.mxu1 %v1889_v2  ;;  %v1695_v2 = vld [vmem:[%s2996_s3 + $0x3a8] sm:$0xff] }
 0x152   : > { %1894 = vmatpush1.bf16.msra.mxu0 %v1893_v8  ;;  %2052 = vmatprep.subr.bf16.mxu1 %v1891_v3  ;;  %v1697_v3 = vld [vmem:[%s2996_s3 + $0x3b8] sm:$0xff] }
 0x153   : > { %1896 = vmatprep.subr.bf16.mxu0 %v1895_v10  ;;  %v1931_v5 = vpack.c.bf16 %v1697_v3, %v1695_v2  ;;  %v1735_v2 = vld [vmem:[%s2996_s3 + $0x4e8] sm:$0xff]  ;;  %v1737_v3 = vld [vmem:[%s2996_s3 + $0x4f8] sm:$0xff] }
 0x155   : > { %2054 = vmatpush1.bf16.msra.mxu1 %v1893_v8  ;;  %v1699_v8 = vld [vmem:[%s2996_s3 + $0x3c8] sm:$0xff] }
 0x156   : > { %1898 = vmatpush1.bf16.msra.mxu0 %v1897_v15  ;;  %2056 = vmatprep.subr.bf16.mxu1 %v1895_v10  ;;  %v1701_v10 = vld [vmem:[%s2996_s3 + $0x3d8] sm:$0xff] }
 0x157   : > { %1900 = vmatprep.subr.bf16.mxu0 %v1899_v16  ;;  %v1935_v11 = vpack.c.bf16 %v1701_v10, %v1699_v8  ;;  %v1973_v8 = vpack.c.bf16 %v1736_v6, %v1734_v40 }
 0x159   : > { %2058 = vmatpush1.bf16.msra.mxu1 %v1897_v15  ;;  %v1703_v15 = vld [vmem:[%s2996_s3 + $0x3e8] sm:$0xff] }
 0x15a   : > { %1902 = vmatpush1.bf16.msra.mxu0 %v1901_v21  ;;  %2060 = vmatprep.subr.bf16.mxu1 %v1899_v16  ;;  %v1705_v16 = vld [vmem:[%s2996_s3 + $0x3f8] sm:$0xff] }
 0x15b   : > { %1904 = vmatprep.subr.bf16.mxu0 %v1903_v24  ;;  %v1939_v18 = vpack.c.bf16 %v1705_v16, %v1703_v15 }
 0x15d   : > { %2062 = vmatpush1.bf16.msra.mxu1 %v1901_v21  ;;  %v1707_v21 = vld [vmem:[%s2996_s3 + $0x408] sm:$0xff] }
 0x15e   : > { %1906 = vmatpush1.bf16.msra.mxu0 %v1905_v29  ;;  %2064 = vmatprep.subr.bf16.mxu1 %v1903_v24  ;;  %v1709_v24 = vld [vmem:[%s2996_s3 + $0x418] sm:$0xff] }
 0x15f   : > { %1908 = vmatprep.subr.bf16.mxu0 %v1907_v31  ;;  %v1943_v26 = vpack.c.bf16 %v1709_v24, %v1707_v21 }
 0x161   : > { %2066 = vmatpush1.bf16.msra.mxu1 %v1905_v29  ;;  %v1711_v29 = vld [vmem:[%s2996_s3 + $0x428] sm:$0xff] }
 0x162   : > { %1910 = vmatpush1.bf16.msra.mxu0 %v1909_v36  ;;  %2068 = vmatprep.subr.bf16.mxu1 %v1907_v31  ;;  %v1713_v31 = vld [vmem:[%s2996_s3 + $0x438] sm:$0xff] }
 0x163   : > { %1912 = vmatprep.subr.bf16.mxu0 %v1911_v37  ;;  %v1947_v33 = vpack.c.bf16 %v1713_v31, %v1711_v29 }
 0x165   : > { %882 = vmatmul.mubr.f32.vlgmr.msra.gmra.mrb[8].mxu0 %v2564_v60  ;;  %2070 = vmatpush1.bf16.msra.mxu1 %v1909_v36  ;;  %v1687_v60 = vld [vmem:[%s2996_s3 + $0x368] sm:$0xff] }
 0x166   : > { %1914 = vmatpush1.bf16.msra.mxu0 %v1913_v43  ;;  %887 = vmatprep.mubr.f32.mxu0 %v2200_v9  ;;  %v1923_v55 = vpack.c.bf16 %v1689_v53, %v1687_v60  ;;  %v1715_v36 = vld [vmem:[%s2996_s3 + $0x448] sm:$0xff]  ;;  %v1729_v53 = vld [vmem:[%s2996_s3 + $0x4b8] sm:$0xff] }
 0x167   : > { %2072 = vmatprep.subr.bf16.mxu1 %v1911_v37  ;;  %1916 = vmatprep.subr.bf16.mxu0 %v1915_v44  ;;  %v1717_v37 = vld [vmem:[%s2996_s3 + $0x458] sm:$0xff]  ;;  %v1727_v60 = vld [vmem:[%s2996_s3 + $0x4a8] sm:$0xff] }
 0x168   : > { %1341 = vmatmul.mubr.f32.vlgmr.msra.gmra.mrb[8].mxu1 %v2586_v7  ;;  %v1951_v39 = vpack.c.bf16 %v1717_v37, %v1715_v36 }
 0x169   : > { %888 = vmatmul.mubr.f32.gmra.mrb[14].mxu0 %v2586_v7  ;;  %2074 = vmatpush1.bf16.msra.mxu1 %v1913_v43  ;;  %v1721_v43 = vld [vmem:[%s2996_s3 + $0x478] sm:$0xff] }
 0x16a   : > { %1918 = vmatpush1.bf16.msra.mxu0 %v1917_v49  ;;  %1346 = vmatprep.mubr.f32.mxu1 %v2200_v9 }
 0x16b   : > { %2076 = vmatprep.subr.bf16.mxu1 %v1915_v44  ;;  %1920 = vmatprep.subr.bf16.mxu0 %v1919_v50  ;;  %v1953_v44 = vpack.c.bf16 %v1716_v42, %v1714_v41 }
 0x16c   : > { %1347 = vmatmul.mubr.f32.gmra.mrb[14].mxu1 %v2614_v22  ;;  %995 = vmatprep.mubr.f32.mxu0 %v2200_v9 }
 0x16d   : > { %2078 = vmatpush1.bf16.msra.mxu1 %v1917_v49  ;;  %1417 = vmatprep.mubr.f32.mxu1 %v2200_v9  ;;  %v1957_v49 = vpack.c.bf16 %v1720_v47, %v1718_v46 }
 0x16e   : > { %1922 = vmatpush1.bf16.msra.mxu0 %v1921_v54  ;;  %2080 = vmatprep.subr.bf16.mxu1 %v1919_v50 }
 0x16f   : > { %1924 = vmatprep.subr.bf16.mxu0 %v1923_v55 }
 0x171   : > { %2082 = vmatpush1.bf16.msra.mxu1 %v1921_v54  ;;  %v1961_v54 = vpack.c.bf16 %v1724_v52, %v1722_v51 }
 0x172   : > { %1926 = vmatpush1.bf16.msra.mxu0 %v1925_v62  ;;  %2084 = vmatprep.subr.bf16.mxu1 %v1923_v55  ;;  %v1963_v55 = vpack.c.bf16 %v1729_v53, %v1727_v60 }
 0x173   : > { %1928 = vmatprep.subr.bf16.mxu0 %v1927_v63 }
 0x175   : > { %2086 = vmatpush1.bf16.msra.mxu1 %v1925_v62  ;;  %v1965_v62 = vpack.c.bf16 %v1728_v57, %v1726_v56 }
 0x176   : > { %1930 = vmatpush1.bf16.msra.mxu0 %v1929_v4  ;;  %2088 = vmatprep.subr.bf16.mxu1 %v1927_v63  ;;  %v1967_v63 = vpack.c.bf16 %v1733_v61, %v1731_v58 }
 0x177   : > { %1932 = vmatprep.subr.bf16.mxu0 %v1931_v5 }
 0x179   : > { %2090 = vmatpush1.bf16.msra.mxu1 %v1929_v4  ;;  %v1969_v4 = vpack.c.bf16 %v1732_v1, %v1730_v30 }
 0x17a   : > { %1934 = vmatpush1.bf16.msra.mxu0 %v1933_v59  ;;  %2092 = vmatprep.subr.bf16.mxu1 %v1931_v5  ;;  %v1971_v5 = vpack.c.bf16 %v1737_v3, %v1735_v2 }
 0x17b   : > { %1936 = vmatprep.subr.bf16.mxu0 %v1935_v11 }
 0x17d   : > { %2094 = vmatpush1.bf16.msra.mxu1 %v1933_v59 }
 0x17e   : > { %1938 = vmatpush1.bf16.msra.mxu0 %v1937_v17  ;;  %2096 = vmatprep.subr.bf16.mxu1 %v1935_v11 }
 0x17f   : > { %1940 = vmatprep.subr.bf16.mxu0 %v1939_v18 }
 0x181   : > { %2098 = vmatpush1.bf16.msra.mxu1 %v1937_v17 }
 0x182   : > { %1942 = vmatpush1.bf16.msra.mxu0 %v1941_v25  ;;  %2100 = vmatprep.subr.bf16.mxu1 %v1939_v18 }
 0x183   : > { %1944 = vmatprep.subr.bf16.mxu0 %v1943_v26 }
 0x185   : > { %996 = vmatmul.mubr.f32.vlgmr.msra.gmra.mrb[8].mxu0 %v2586_v7  ;;  %2102 = vmatpush1.bf16.msra.mxu1 %v1941_v25  ;;  %v1719_v7 = vld [vmem:[%s2996_s3 + $0x468] sm:$0xff] }
 0x186   : > { %1946 = vmatpush1.bf16.msra.mxu0 %v1945_v32  ;;  %1001 = vmatprep.mubr.f32.mxu0 %v2200_v9  ;;  %v1955_v45 = vpack.c.bf16 %v1721_v43, %v1719_v7 }
 0x187   : > { %2104 = vmatprep.subr.bf16.mxu1 %v1943_v26  ;;  %1948 = vmatprep.subr.bf16.mxu0 %v1947_v33 }
 0x188   : > { %1418 = vmatmul.mubr.f32.vlgmr.msra.gmra.mrb[8].mxu1 %v2573_v0 }
 0x189   : > { %1002 = vmatmul.mubr.f32.gmra.mrb[16].mxu0 %v2614_v22  ;;  %2106 = vmatpush1.bf16.msra.mxu1 %v1945_v32  ;;  %v1723_v22 = vld [vmem:[%s2996_s3 + $0x488] sm:$0xff] }
 0x18a   : > { %1950 = vmatpush1.bf16.msra.mxu0 %v1949_v38  ;;  %1423 = vmatprep.mubr.f32.mxu1 %v2200_v9  ;;  %v1959_v50 = vpack.c.bf16 %v1725_v48, %v1723_v22 }
 0x18b   : > { %2108 = vmatprep.subr.bf16.mxu1 %v1947_v33  ;;  %1952 = vmatprep.subr.bf16.mxu0 %v1951_v39  ;;  %v1738_v33 = vld [vmem:[%s2997_s4] ss:$0 sm:$0xff] }
 0x18c   : > { %1424 = vmatmul.mubr.f32.gmra.mrb[16].mxu1 %v2596_v13  ;;  %1113 = vmatprep.mubr.f32.mxu0 %v2200_v9 }
 0x18d   : > { %2110 = vmatpush1.bf16.msra.mxu1 %v1949_v38  ;;  %1497 = vmatprep.mubr.f32.mxu1 %v2200_v9 }
 0x18e   : > { %1954 = vmatpush1.bf16.msra.mxu0 %v1953_v44  ;;  %2112 = vmatprep.subr.bf16.mxu1 %v1951_v39 }
 0x18f   : > { %1956 = vmatprep.subr.bf16.mxu0 %v1955_v45 }
 0x191   : > { %2114 = vmatpush1.bf16.msra.mxu1 %v1953_v44 }
 0x192   : > { %1958 = vmatpush1.bf16.msra.mxu0 %v1957_v49  ;;  %2116 = vmatprep.subr.bf16.mxu1 %v1955_v45 }
 0x193   : > { %1960 = vmatprep.subr.bf16.mxu0 %v1959_v50 }
 0x195   : > { %2118 = vmatpush1.bf16.msra.mxu1 %v1957_v49 }
 0x196   : > { %1962 = vmatpush1.bf16.msra.mxu0 %v1961_v54  ;;  %2120 = vmatprep.subr.bf16.mxu1 %v1959_v50 }
 0x197   : > { %1964 = vmatprep.subr.bf16.mxu0 %v1963_v55 }
 0x199   : > { %2122 = vmatpush1.bf16.msra.mxu1 %v1961_v54 }
 0x19a   : > { %1966 = vmatpush1.bf16.msra.mxu0 %v1965_v62  ;;  %2124 = vmatprep.subr.bf16.mxu1 %v1963_v55 }
 0x19b   : > { %1968 = vmatprep.subr.bf16.mxu0 %v1967_v63 }
 0x19d   : > { %2126 = vmatpush1.bf16.msra.mxu1 %v1965_v62 }
 0x19e   : > { %1970 = vmatpush1.bf16.msra.mxu0 %v1969_v4  ;;  %2128 = vmatprep.subr.bf16.mxu1 %v1967_v63 }
 0x19f   : > { %1972 = vmatprep.subr.bf16.mxu0 %v1971_v5 }
 0x1a1   : > { %2130 = vmatpush1.bf16.msra.mxu1 %v1969_v4 }
 0x1a2   : > { %1974 = vmatpush1.bf16.msra.mxu0 %v1973_v8  ;;  %2132 = vmatprep.subr.bf16.mxu1 %v1971_v5 }
 0x1a5   : > { %1114 = vmatmul.mubr.f32.vlgmr.msra.gmra.mrb[8].mxu0 %v2573_v0  ;;  %2134 = vmatpush1.bf16.msra.mxu1 %v1973_v8 }
 0x1a6   : > { %1119 = vmatprep.mubr.f32.mxu0 %v2200_v9 }
 0x1a8   : > { %1498 = vmatmul.mubr.f32.vlgmr.msra.gmra.mrb[8].mxu1 %v2596_v13 }
 0x1a9   : > { %1120 = vmatmul.mubr.f32.gmra.mrb[18].mxu0 %v2596_v13  ;;  %1503 = vmatprep.mubr.f32.mxu1 %v2200_v9 }
 0x1ac   : > { %1504 = vmatmul.mubr.f32.gmra.mrb[18].mxu1 %v2617_v23 }
 0x1fe   : > { %v695_v10 = vpop.f32.mrb[10].mxu0 }
 0x1ff   : > { %v1198_v59 = vpop.f32.mrb[10].mxu1  ;;  %v696_v11 = vpop.f32.mrb[11].mxu0 }
 0x200   : > { %v1199_v12 = vpop.f32.mrb[11].mxu1 }
 0x21c   : > { %v770_v14 = vpop.f32.mrb[12].mxu0 }
 0x21d   : > { %v771_v15 = vpop.f32.mrb[13].mxu0 }
 0x21f   : > { %v1273_v0 = vpop.f32.mrb[12].mxu1 }
 0x220   : > { %v1274_v16 = vpop.f32.mrb[13].mxu1 }
 0x23c   : > { %v889_v17 = vpop.f32.mrb[14].mxu0 }
 0x23d   : > { %v890_v18 = vpop.f32.mrb[15].mxu0 }
 0x23f   : > { %v1348_v19 = vpop.f32.mrb[14].mxu1 }
 0x240   : > { %v1349_v20 = vpop.f32.mrb[15].mxu1 }
 0x25c   : > { %v1003_v21 = vpop.f32.mrb[16].mxu0 }
 0x25d   : > { %v1004_v13 = vpop.f32.mrb[17].mxu0 }
 0x25f   : > { %v1425_v24 = vpop.f32.mrb[16].mxu1 }
 0x260   : > { %v1426_v9 = vpop.f32.mrb[17].mxu1 }
 0x278   : > { %v1115_v23 = vpop.f32.mrb[8].mxu0 }
 0x279   : > { %v1117_v25 = vpop.f32.mrb[9].mxu0 }
 0x27b   : > { %v1499_v26 = vpop.f32.mrb[8].mxu1 }
 0x27c   : > { %v1510_v27 = vmax.f32 %v1115_v23, %v1499_v26  ;;  %v1121_v28 = vpop.f32.mrb[18].mxu0  ;;  %v1501_v29 = vpop.f32.mrb[9].mxu1 }
 0x27d   : > { %v1511_v31 = vmax.f32 %v1117_v25, %v1501_v29  ;;  %v1122_v32 = vpop.f32.mrb[19].mxu0 }
 0x27f   : > { %v1512_v34 = vmax.f32 %v1510_v27, %v1511_v31  ;;  %v1505_v35 = vpop.f32.mrb[18].mxu1 }
 0x280   : > { %v1506_v36 = vpop.f32.mrb[19].mxu1 }
 0x281   : > { %v1520_v37 = vadd.f32 %v1738_v33, %v1512_v34 }
 0x283   : > { %v1521_v38 = vmax.f32 %v1520_v37, 0.0 }
 0x285   : > { %1522 = vst [vmem:[%s274_s14] sm:$0xff] %v1521_v38 }
 0x286 PF: > { %p12_p9 = scmp.ge.s32.totalorder %s2248_s22, 4   ;;  %s2999_s18 = smov %s2194_s19 }
 0x287   : > { %s3000_s19 = smov %s2257_s25  ;;  %s3001_s20 = smov %s2248_s22 }
 0x288   :  { %14 = sbr.rel (!%p12_p9) target bundleno = 2 (0x2), region = 103 }

</bundles_post_ra>
